<compile_context>
chip_gen: v5e
topology: v5e:2x2
jax: 0.10.0
libtpu: 0.0.40
codegen_flags: <defaults>
</compile_context>

<pallas_src>
import functools

import jax
import jax.numpy as jnp
from jax.experimental import pallas as pl
from jax.experimental.pallas import tpu as pltpu


def _round_up(x, m):
    return (x + m - 1) // m * m


def _cdiv(a, b):
    return (a + b - 1) // b


# --------------------------------------------------------------------------
# Kernel: whole MLP on one (tm, K_pad) row tile, everything VMEM-resident.
# --------------------------------------------------------------------------
def _fused_mlp_kernel(*refs, num_layers, compute_dtype):
    """refs = (x, w0, b0, w1, b1, ..., o)."""
    x_ref = refs[0]
    o_ref = refs[-1]
    h = x_ref[...].astype(compute_dtype)
    for i in range(num_layers):
        w = refs[1 + 2 * i][...]          # (K_pad, N_pad), compute_dtype
        b = refs[2 + 2 * i][...]          # (1, N_pad), f32
        # MXU matmul with f32 accumulation; epilogue (bias + ReLU) in f32.
        y = jnp.dot(h, w, preferred_element_type=jnp.float32) + b
        if i < num_layers - 1:
            h = jnp.maximum(y, 0.0).astype(compute_dtype)
        else:
            h = y
    o_ref[...] = h.astype(o_ref.dtype)


# --------------------------------------------------------------------------
# Parameter init (mimics nn.Linear) and one-time prep (transpose + pad + cast).
# --------------------------------------------------------------------------
def init_mlp_params(key, input_dim, hidden_dim, output_dim, num_layers):
    """PyTorch layout: w is (out, in), b is (out,); U(-1/sqrt(in), 1/sqrt(in))."""
    h = [hidden_dim] * (num_layers - 1)
    params = []
    for n_in, n_out in zip([input_dim] + h, h + [output_dim]):
        key, kw, kb = jax.random.split(key, 3)
        bound = 1.0 / (n_in ** 0.5)
        w = jax.random.uniform(kw, (n_out, n_in), jnp.float32, -bound, bound)
        b = jax.random.uniform(kb, (n_out,), jnp.float32, -bound, bound)
        params.append((w, b))
    return params


def prepare_padded_params(params, compute_dtype=jnp.float32, lane_multiple=128):
    """Transpose to (in, out), zero-pad both dims to `lane_multiple`, cast weights.

    Padding is inert: padded weight rows/cols and bias entries are 0, so padded
    activation columns stay exactly 0 through matmul + bias + ReLU.
    """
    padded = []
    for w, b in params:
        n_out, n_in = w.shape
        k_pad = _round_up(n_in, lane_multiple)
        n_pad = _round_up(n_out, lane_multiple)
        w_t = jnp.zeros((k_pad, n_pad), compute_dtype)
        w_t = w_t.at[:n_in, :n_out].set(w.T.astype(compute_dtype))
        b_p = jnp.zeros((1, n_pad), jnp.float32)
        b_p = b_p.at[0, :n_out].set(b.astype(jnp.float32))
        padded.append((w_t, b_p))
    return padded


# --------------------------------------------------------------------------
# Tiling / wrapper.
# --------------------------------------------------------------------------
def _choose_tm(M, tm_max):
    """Balanced row tiles; prefer >=2 tiles (v7x megacore) when each has >=8 rows."""
    max_tiles = max(1, M // 8)
    n_tiles = min(max(2, _cdiv(M, tm_max)), max_tiles)
    return _round_up(_cdiv(M, n_tiles), 8)


def fused_mlp_2d(x2d, padded_params, output_dim, *, compute_dtype, out_dtype,
                 tm_max, single_buffer_weights, vmem_ceiling_bytes):
    """x2d: (M, K) -> (M, output_dim); all layers fused into one pallas_call."""
    M, K = x2d.shape
    num_layers = len(padded_params)
    k_pad = padded_params[0][0].shape[0]
    n_last_pad = padded_params[-1][0].shape[1]

    tm = _choose_tm(M, tm_max)
    m_pad = _round_up(M, tm)

    # Skip the extra HBM round trip when x is already aligned; the kernel casts
    # its x tile to compute_dtype itself.
    if m_pad == M and k_pad == K:
        x_in = x2d
    else:
        x_in = jnp.zeros((m_pad, k_pad), compute_dtype)
        x_in = x_in.at[:M, :K].set(x2d.astype(compute_dtype))

    # Constant-index weight/bias blocks only need a single VMEM buffer.
    w_kwargs = dict(pipeline_mode=pl.Buffered(1)) if single_buffer_weights else {}

    in_specs = [pl.BlockSpec((tm, k_pad), lambda i: (i, 0))]
    flat_inputs = [x_in]
    for w, b in padded_params:
        in_specs.append(pl.BlockSpec(w.shape, lambda i: (0, 0), **w_kwargs))
        in_specs.append(pl.BlockSpec(b.shape, lambda i: (0, 0), **w_kwargs))
        flat_inputs.append(w)
        flat_inputs.append(b)

    # Explicit VMEM budget: resident weights/biases (x buffer count) +
    # double-buffered x/out tiles + f32 intermediate headroom, clamped to a
    # generation-aware ceiling supplied by the caller.
    w_buf = 1 if single_buffer_weights else 2
    weight_bytes = sum(
        w_buf * (w.size * w.dtype.itemsize + b.size * b.dtype.itemsize)
        for w, b in padded_params)
    x_bytes = 2 * tm * k_pad * jnp.dtype(x_in.dtype).itemsize
    o_bytes = 2 * tm * n_last_pad * jnp.dtype(out_dtype).itemsize
    widest = max([k_pad] + [w.shape[1] for w, _ in padded_params])
    act_bytes = 3 * tm * widest * 4      # f32 y/h temporaries headroom
    needed = weight_bytes + x_bytes + o_bytes + act_bytes
    vmem_limit = int(min(max(needed * 1.25, 16 * 2 ** 20), vmem_ceiling_bytes))

    out_pad = pl.pallas_call(
        functools.partial(_fused_mlp_kernel, num_layers=num_layers,
                          compute_dtype=compute_dtype),
        out_shape=jax.ShapeDtypeStruct((m_pad, n_last_pad), out_dtype),
        grid=(m_pad // tm,),
        in_specs=in_specs,
        # Lane-dense output (N padded to lane multiple) -> unmasked vector stores.
        out_specs=pl.BlockSpec((tm, n_last_pad), lambda i: (i, 0)),
        compiler_params=pltpu.CompilerParams(
            # Row-tile axis is independent -> shards across TCs on v7x megacore.
            dimension_semantics=("parallel",),
            vmem_limit_bytes=vmem_limit),
    )(*flat_inputs)

    return out_pad[:M, :output_dim]


@functools.partial(
    jax.jit,
    static_argnames=("output_dim", "compute_dtype", "out_dtype", "tm_max",
                     "single_buffer_weights", "vmem_ceiling_bytes"))
def mlp_forward(x, padded_params, output_dim, *, compute_dtype=jnp.float32,
                out_dtype=jnp.float32, tm_max=512, single_buffer_weights=True,
                vmem_ceiling_bytes=100 * 2 ** 20):
    """Matches MLP.forward: ReLU after every layer except the last."""
    lead = x.shape[:-1]
    x2d = x.reshape(-1, x.shape[-1])
    out2d = fused_mlp_2d(
        x2d, padded_params, output_dim, compute_dtype=compute_dtype,
        out_dtype=out_dtype, tm_max=tm_max,
        single_buffer_weights=single_buffer_weights,
        vmem_ceiling_bytes=vmem_ceiling_bytes)
    return out2d.reshape(*lead, output_dim)


def run_mlp(x, padded_params, output_dim, **kw):
    """Run with single-buffered weights; fall back to default double buffering
    if this runtime rejects pipeline_mode=pl.Buffered(1)."""
    try:
        out = mlp_forward(x, padded_params, output_dim,
                          single_buffer_weights=True, **kw)
        return jax.block_until_ready(out)
    except Exception:
        out = mlp_forward(x, padded_params, output_dim,
                          single_buffer_weights=False, **kw)
        return jax.block_until_ready(out)


def mlp_reference(x, params):
    for i, (w, b) in enumerate(params):
        x = x @ w.T + b
        if i < len(params) - 1:
            x = jax.nn.relu(x)
    return x


if __name__ == "__main__":
    key = jax.random.PRNGKey(0)
    batch, seq = 2, 8
    input_dim, hidden_dim, output_dim, num_layers = 32, 64, 16, 3

    kx, kp = jax.random.split(key)
    x = jax.random.normal(kx, (batch, seq, input_dim), jnp.float32)
    params = init_mlp_params(kp, input_dim, hidden_dim, output_dim, num_layers)
    ref = mlp_reference(x, params)

    # Generation-aware knobs (string match only; safe on any backend).
    kind = jax.devices()[0].device_kind.lower()
    is_v5 = "v5" in kind
    is_v7 = "v7" in kind
    lane_multiple = 128 if is_v5 else 256          # MXU is 128x128 on v5e, 256x256 after
    tm_max = 256 if is_v5 else 512                 # bigger row panels on v6e/v7x
    vmem_ceiling = (48 if is_v7 else 100) * 2 ** 20  # v7x has 64 MiB physical VMEM/TC

    # ---- f32 path: exact check vs the fp32 reference ----------------------
    padded_f32 = prepare_padded_params(params, jnp.float32, lane_multiple)
    out_f32 = run_mlp(x, padded_f32, output_dim,
                      compute_dtype=jnp.float32, out_dtype=jnp.float32,
                      tm_max=tm_max, vmem_ceiling_bytes=vmem_ceiling)
    assert out_f32.shape == (batch, seq, output_dim), out_f32.shape
    assert jnp.allclose(out_f32, ref, atol=1e-5, rtol=1e-5), "f32 mismatch"

    # ---- bf16 path: MXU-native operands, f32 accumulation, bf16 output ----
    padded_bf16 = prepare_padded_params(params, jnp.bfloat16, lane_multiple)
    out_bf16 = run_mlp(x, padded_bf16, output_dim,
                       compute_dtype=jnp.bfloat16, out_dtype=jnp.bfloat16,
                       tm_max=tm_max, vmem_ceiling_bytes=vmem_ceiling)
    assert out_bf16.shape == (batch, seq, output_dim), out_bf16.shape
    assert jnp.allclose(out_bf16.astype(jnp.float32), ref,
                        atol=1e-1, rtol=5e-2), "bf16 mismatch"

    print("KERNEL_OK")
</pallas_src>

<mosaic_0001>
module attributes {stable_mosaic.version = 11 : i64} {
  func.func @_fused_mlp_kernel(%arg0: i32, %arg1: memref<8x256xf32, #tpu.memory_space<vmem>>, %arg2: memref<256x256xf32, #tpu.memory_space<vmem>>, %arg3: memref<1x256xf32, #tpu.memory_space<vmem>>, %arg4: memref<256x256xf32, #tpu.memory_space<vmem>>, %arg5: memref<1x256xf32, #tpu.memory_space<vmem>>, %arg6: memref<256x256xf32, #tpu.memory_space<vmem>>, %arg7: memref<1x256xf32, #tpu.memory_space<vmem>>, %arg8: memref<8x256xf32, #tpu.memory_space<vmem>>) attributes {dimension_semantics = [#tpu.dimension_semantics<parallel>], iteration_bounds = array<i64: 2>, scalar_prefetch = 0 : i64, scratch_operands = 0 : i64, tpu.core_type = #tpu.core_type<tc>, window_params = [{transform_indices = @transform_0, window_bounds = array<i64: 8, 256>}, {pipeline_mode = #tpu.pipeline_mode<synchronous>, transform_indices = @transform_1, window_bounds = array<i64: 256, 256>}, {pipeline_mode = #tpu.pipeline_mode<synchronous>, transform_indices = @transform_2, window_bounds = array<i64: 1, 256>}, {pipeline_mode = #tpu.pipeline_mode<synchronous>, transform_indices = @transform_3, window_bounds = array<i64: 256, 256>}, {pipeline_mode = #tpu.pipeline_mode<synchronous>, transform_indices = @transform_4, window_bounds = array<i64: 1, 256>}, {pipeline_mode = #tpu.pipeline_mode<synchronous>, transform_indices = @transform_5, window_bounds = array<i64: 256, 256>}, {pipeline_mode = #tpu.pipeline_mode<synchronous>, transform_indices = @transform_6, window_bounds = array<i64: 1, 256>}, {transform_indices = @transform_7, window_bounds = array<i64: 8, 256>}]} {
    %c0 = arith.constant 0 : index
    %c0_0 = arith.constant 0 : index
    %0 = vector.load %arg1[%c0, %c0_0] : memref<8x256xf32, #tpu.memory_space<vmem>>, vector<8x256xf32>
    %c0_1 = arith.constant 0 : index
    %c0_2 = arith.constant 0 : index
    %1 = vector.load %arg2[%c0_1, %c0_2] : memref<256x256xf32, #tpu.memory_space<vmem>>, vector<256x256xf32>
    %c0_3 = arith.constant 0 : index
    %c0_4 = arith.constant 0 : index
    %2 = vector.load %arg3[%c0_3, %c0_4] : memref<1x256xf32, #tpu.memory_space<vmem>>, vector<1x256xf32>
    %cst = arith.constant dense<0.000000e+00> : vector<8x256xf32>
    %3 = tpu.matmul %0, %1, %cst {dimension_numbers = #tpu.dot_dimension_numbers<[1], [0], [0], [1], [0, 0, 1, 1], [], []>} : vector<8x256xf32>, vector<256x256xf32>, vector<8x256xf32> -> vector<8x256xf32>
    %4 = vector.broadcast %2 : vector<1x256xf32> to vector<8x256xf32>
    %5 = arith.addf %3, %4 : vector<8x256xf32>
    %cst_5 = arith.constant 0.000000e+00 : f32
    %6 = vector.broadcast %cst_5 : f32 to vector<8x256xf32>
    %7 = arith.maximumf %5, %6 : vector<8x256xf32>
    %c0_6 = arith.constant 0 : index
    %c0_7 = arith.constant 0 : index
    %8 = vector.load %arg4[%c0_6, %c0_7] : memref<256x256xf32, #tpu.memory_space<vmem>>, vector<256x256xf32>
    %c0_8 = arith.constant 0 : index
    %c0_9 = arith.constant 0 : index
    %9 = vector.load %arg5[%c0_8, %c0_9] : memref<1x256xf32, #tpu.memory_space<vmem>>, vector<1x256xf32>
    %cst_10 = arith.constant dense<0.000000e+00> : vector<8x256xf32>
    %10 = tpu.matmul %7, %8, %cst_10 {dimension_numbers = #tpu.dot_dimension_numbers<[1], [0], [0], [1], [0, 0, 1, 1], [], []>} : vector<8x256xf32>, vector<256x256xf32>, vector<8x256xf32> -> vector<8x256xf32>
    %11 = vector.broadcast %9 : vector<1x256xf32> to vector<8x256xf32>
    %12 = arith.addf %10, %11 : vector<8x256xf32>
    %cst_11 = arith.constant 0.000000e+00 : f32
    %13 = vector.broadcast %cst_11 : f32 to vector<8x256xf32>
    %14 = arith.maximumf %12, %13 : vector<8x256xf32>
    %c0_12 = arith.constant 0 : index
    %c0_13 = arith.constant 0 : index
    %15 = vector.load %arg6[%c0_12, %c0_13] : memref<256x256xf32, #tpu.memory_space<vmem>>, vector<256x256xf32>
    %c0_14 = arith.constant 0 : index
    %c0_15 = arith.constant 0 : index
    %16 = vector.load %arg7[%c0_14, %c0_15] : memref<1x256xf32, #tpu.memory_space<vmem>>, vector<1x256xf32>
    %cst_16 = arith.constant dense<0.000000e+00> : vector<8x256xf32>
    %17 = tpu.matmul %14, %15, %cst_16 {dimension_numbers = #tpu.dot_dimension_numbers<[1], [0], [0], [1], [0, 0, 1, 1], [], []>} : vector<8x256xf32>, vector<256x256xf32>, vector<8x256xf32> -> vector<8x256xf32>
    %18 = vector.broadcast %16 : vector<1x256xf32> to vector<8x256xf32>
    %19 = arith.addf %17, %18 : vector<8x256xf32>
    %c0_17 = arith.constant 0 : index
    %c0_18 = arith.constant 0 : index
    %20 = vector.load %arg8[%c0_17, %c0_18] : memref<8x256xf32, #tpu.memory_space<vmem>>, vector<8x256xf32>
    tpu.vector_store %arg8[%c0_17, %c0_18], %19 {strides = array<i32>} : memref<8x256xf32, #tpu.memory_space<vmem>>, vector<8x256xf32>,
    return
  }
  func.func @transform_0(%arg0: i32) -> (i32, i32) {
    %c0_i32 = arith.constant 0 : i32
    %c0_i32_0 = arith.constant 0 : i32
    return %arg0, %c0_i32 : i32, i32
  }
  func.func @transform_1(%arg0: i32) -> (i32, i32) {
    %c0_i32 = arith.constant 0 : i32
    %c0_i32_0 = arith.constant 0 : i32
    %c0_i32_1 = arith.constant 0 : i32
    return %c0_i32, %c0_i32_0 : i32, i32
  }
  func.func @transform_2(%arg0: i32) -> (i32, i32) {
    %c0_i32 = arith.constant 0 : i32
    %c0_i32_0 = arith.constant 0 : i32
    %c0_i32_1 = arith.constant 0 : i32
    return %c0_i32, %c0_i32_0 : i32, i32
  }
  func.func @transform_3(%arg0: i32) -> (i32, i32) {
    %c0_i32 = arith.constant 0 : i32
    %c0_i32_0 = arith.constant 0 : i32
    %c0_i32_1 = arith.constant 0 : i32
    return %c0_i32, %c0_i32_0 : i32, i32
  }
  func.func @transform_4(%arg0: i32) -> (i32, i32) {
    %c0_i32 = arith.constant 0 : i32
    %c0_i32_0 = arith.constant 0 : i32
    %c0_i32_1 = arith.constant 0 : i32
    return %c0_i32, %c0_i32_0 : i32, i32
  }
  func.func @transform_5(%arg0: i32) -> (i32, i32) {
    %c0_i32 = arith.constant 0 : i32
    %c0_i32_0 = arith.constant 0 : i32
    %c0_i32_1 = arith.constant 0 : i32
    return %c0_i32, %c0_i32_0 : i32, i32
  }
  func.func @transform_6(%arg0: i32) -> (i32, i32) {
    %c0_i32 = arith.constant 0 : i32
    %c0_i32_0 = arith.constant 0 : i32
    %c0_i32_1 = arith.constant 0 : i32
    return %c0_i32, %c0_i32_0 : i32, i32
  }
  func.func @transform_7(%arg0: i32) -> (i32, i32) {
    %c0_i32 = arith.constant 0 : i32
    %c0_i32_0 = arith.constant 0 : i32
    return %arg0, %c0_i32 : i32, i32
  }
}

module attributes {stable_mosaic.version = 11 : i64} {
  func.func @_fused_mlp_kernel(%arg0: i32, %arg1: memref<8x256xf32, #tpu.memory_space<vmem>>, %arg2: memref<256x256xf32, #tpu.memory_space<vmem>>, %arg3: memref<1x256xf32, #tpu.memory_space<vmem>>, %arg4: memref<256x256xf32, #tpu.memory_space<vmem>>, %arg5: memref<1x256xf32, #tpu.memory_space<vmem>>, %arg6: memref<256x256xf32, #tpu.memory_space<vmem>>, %arg7: memref<1x256xf32, #tpu.memory_space<vmem>>, %arg8: memref<8x256xf32, #tpu.memory_space<vmem>>) attributes {dimension_semantics = [#tpu.dimension_semantics<parallel>], iteration_bounds = array<i64: 2>, scalar_prefetch = 0 : i64, scratch_operands = 0 : i64, tpu.core_type = #tpu.core_type<tc>, window_params = [{transform_indices = @transform_0, window_bounds = array<i64: 8, 256>}, {pipeline_mode = #tpu.pipeline_mode<synchronous>, transform_indices = @transform_1, window_bounds = array<i64: 256, 256>}, {pipeline_mode = #tpu.pipeline_mode<synchronous>, transform_indices = @transform_2, window_bounds = array<i64: 1, 256>}, {pipeline_mode = #tpu.pipeline_mode<synchronous>, transform_indices = @transform_3, window_bounds = array<i64: 256, 256>}, {pipeline_mode = #tpu.pipeline_mode<synchronous>, transform_indices = @transform_4, window_bounds = array<i64: 1, 256>}, {pipeline_mode = #tpu.pipeline_mode<synchronous>, transform_indices = @transform_5, window_bounds = array<i64: 256, 256>}, {pipeline_mode = #tpu.pipeline_mode<synchronous>, transform_indices = @transform_6, window_bounds = array<i64: 1, 256>}, {transform_indices = @transform_7, window_bounds = array<i64: 8, 256>}]} {
    %c0 = arith.constant 0 : index
    %c0_0 = arith.constant 0 : index
    %0 = vector.load %arg1[%c0, %c0_0] : memref<8x256xf32, #tpu.memory_space<vmem>>, vector<8x256xf32>
    %c0_1 = arith.constant 0 : index
    %c0_2 = arith.constant 0 : index
    %1 = vector.load %arg2[%c0_1, %c0_2] : memref<256x256xf32, #tpu.memory_space<vmem>>, vector<256x256xf32>
    %c0_3 = arith.constant 0 : index
    %c0_4 = arith.constant 0 : index
    %2 = vector.load %arg3[%c0_3, %c0_4] : memref<1x256xf32, #tpu.memory_space<vmem>>, vector<1x256xf32>
    %cst = arith.constant dense<0.000000e+00> : vector<8x256xf32>
    %3 = tpu.matmul %0, %1, %cst {dimension_numbers = #tpu.dot_dimension_numbers<[1], [0], [0], [1], [0, 0, 1, 1], [], []>} : vector<8x256xf32>, vector<256x256xf32>, vector<8x256xf32> -> vector<8x256xf32>
    %4 = vector.broadcast %2 : vector<1x256xf32> to vector<8x256xf32>
    %5 = arith.addf %3, %4 : vector<8x256xf32>
    %cst_5 = arith.constant 0.000000e+00 : f32
    %6 = vector.broadcast %cst_5 : f32 to vector<8x256xf32>
    %7 = arith.maximumf %5, %6 : vector<8x256xf32>
    %c0_6 = arith.constant 0 : index
    %c0_7 = arith.constant 0 : index
    %8 = vector.load %arg4[%c0_6, %c0_7] : memref<256x256xf32, #tpu.memory_space<vmem>>, vector<256x256xf32>
    %c0_8 = arith.constant 0 : index
    %c0_9 = arith.constant 0 : index
    %9 = vector.load %arg5[%c0_8, %c0_9] : memref<1x256xf32, #tpu.memory_space<vmem>>, vector<1x256xf32>
    %cst_10 = arith.constant dense<0.000000e+00> : vector<8x256xf32>
    %10 = tpu.matmul %7, %8, %cst_10 {dimension_numbers = #tpu.dot_dimension_numbers<[1], [0], [0], [1], [0, 0, 1, 1], [], []>} : vector<8x256xf32>, vector<256x256xf32>, vector<8x256xf32> -> vector<8x256xf32>
    %11 = vector.broadcast %9 : vector<1x256xf32> to vector<8x256xf32>
    %12 = arith.addf %10, %11 : vector<8x256xf32>
    %cst_11 = arith.constant 0.000000e+00 : f32
    %13 = vector.broadcast %cst_11 : f32 to vector<8x256xf32>
    %14 = arith.maximumf %12, %13 : vector<8x256xf32>
    %c0_12 = arith.constant 0 : index
    %c0_13 = arith.constant 0 : index
    %15 = vector.load %arg6[%c0_12, %c0_13] : memref<256x256xf32, #tpu.memory_space<vmem>>, vector<256x256xf32>
    %c0_14 = arith.constant 0 : index
    %c0_15 = arith.constant 0 : index
    %16 = vector.load %arg7[%c0_14, %c0_15] : memref<1x256xf32, #tpu.memory_space<vmem>>, vector<1x256xf32>
    %cst_16 = arith.constant dense<0.000000e+00> : vector<8x256xf32>
    %17 = tpu.matmul %14, %15, %cst_16 {dimension_numbers = #tpu.dot_dimension_numbers<[1], [0], [0], [1], [0, 0, 1, 1], [], []>} : vector<8x256xf32>, vector<256x256xf32>, vector<8x256xf32> -> vector<8x256xf32>
    %18 = vector.broadcast %16 : vector<1x256xf32> to vector<8x256xf32>
    %19 = arith.addf %17, %18 : vector<8x256xf32>
    %c0_17 = arith.constant 0 : index
    %c0_18 = arith.constant 0 : index
    %20 = vector.load %arg8[%c0_17, %c0_18] : memref<8x256xf32, #tpu.memory_space<vmem>>, vector<8x256xf32>
    tpu.vector_store %arg8[%c0_17, %c0_18], %19 {strides = array<i32>} : memref<8x256xf32, #tpu.memory_space<vmem>>, vector<8x256xf32>,
    return
  }
  func.func @transform_0(%arg0: i32) -> (i32, i32) {
    %c0_i32 = arith.constant 0 : i32
    %c0_i32_0 = arith.constant 0 : i32
    return %arg0, %c0_i32 : i32, i32
  }
  func.func @transform_1(%arg0: i32) -> (i32, i32) {
    %c0_i32 = arith.constant 0 : i32
    %c0_i32_0 = arith.constant 0 : i32
    %c0_i32_1 = arith.constant 0 : i32
    return %c0_i32, %c0_i32_0 : i32, i32
  }
  func.func @transform_2(%arg0: i32) -> (i32, i32) {
    %c0_i32 = arith.constant 0 : i32
    %c0_i32_0 = arith.constant 0 : i32
    %c0_i32_1 = arith.constant 0 : i32
    return %c0_i32, %c0_i32_0 : i32, i32
  }
  func.func @transform_3(%arg0: i32) -> (i32, i32) {
    %c0_i32 = arith.constant 0 : i32
    %c0_i32_0 = arith.constant 0 : i32
    %c0_i32_1 = arith.constant 0 : i32
    return %c0_i32, %c0_i32_0 : i32, i32
  }
  func.func @transform_4(%arg0: i32) -> (i32, i32) {
    %c0_i32 = arith.constant 0 : i32
    %c0_i32_0 = arith.constant 0 : i32
    %c0_i32_1 = arith.constant 0 : i32
    return %c0_i32, %c0_i32_0 : i32, i32
  }
  func.func @transform_5(%arg0: i32) -> (i32, i32) {
    %c0_i32 = arith.constant 0 : i32
    %c0_i32_0 = arith.constant 0 : i32
    %c0_i32_1 = arith.constant 0 : i32
    return %c0_i32, %c0_i32_0 : i32, i32
  }
  func.func @transform_6(%arg0: i32) -> (i32, i32) {
    %c0_i32 = arith.constant 0 : i32
    %c0_i32_0 = arith.constant 0 : i32
    %c0_i32_1 = arith.constant 0 : i32
    return %c0_i32, %c0_i32_0 : i32, i32
  }
  func.func @transform_7(%arg0: i32) -> (i32, i32) {
    %c0_i32 = arith.constant 0 : i32
    %c0_i32_0 = arith.constant 0 : i32
    return %arg0, %c0_i32 : i32, i32
  }
}

</mosaic_0001>

<bundles_post_ra>
// kernel: mlp_forward.1
= control target key start
LH: loop header
LB: loop body
LE: loop exit
PB: predicated region body
PF: predicated region fallthrough
CT: control target
= control target key end

     0   :  { %12 = vsyncpa [#allocation3], 0  ;;  %s1151_s0 = inlined_call_operand.vmem [shape: f32[16,256], index: 0, kind: input, shape index: {}]   ;;  %s1152_s1 = inlined_call_operand.hbm [shape: f32[256,256], index: 1, kind: input, shape index: {}]   ;;  %s1153_s2 = inlined_call_operand.vmem [shape: f32[1,256], index: 2, kind: input, shape index: {}]   ;;  %s1154_s3 = inlined_call_operand.hbm [shape: f32[256,256], index: 3, kind: input, shape index: {}]   ;;  %s1155_s4 = inlined_call_operand.vmem [shape: f32[1,256], index: 4, kind: input, shape index: {}]   ;;  %s1156_s5 = inlined_call_operand.hbm [shape: f32[256,256], index: 5, kind: input, shape index: {}]   ;;  %s1157_s6 = inlined_call_operand.vmem [shape: f32[1,256], index: 6, kind: input, shape index: {}]   ;;  %s1158_s7 = inlined_call_operand.vmem [shape: f32[16,256], index: 7, kind: output, shape index: {}]  }
   0x1   :  { %13 = vsyncpa [#allocation5], 0  ;;  %s1084_s24 = smov 0  }
   0x2 LB: > { %s1090_s25 = sadd.s32 4294967295, %s1037_s24   ;;  %p875_p0 = scmp.ge.s32.totalorder %s1037_s24, 1  ;;  %s1037_s24 = sphi %s1084_s24, %s19_s24  }
   0x3   : > { %p202_p1 = scmp.lt.s32.totalorder %s1037_s24, 3  ;;  %p914_p2 = scmp.eq.s32.totalorder %s1090_s25, 0 }
   0x4   : > { %s230_s28 = sshll.u32 %s1154_s3, 4  ;;  %s213_s9 = sshll.u32 %s1152_s1, 4  ;;  %s231_s28 = int_to_ptr.hbm [resolvable:$true] %s230_s28  ;;  %s214_s9 = int_to_ptr.hbm [resolvable:$true] %s213_s9 }
   0x5   : > { %p1098_p3 = pnand %p875_p0, %p202_p1  ;;  %s1039_s10 = smov [#allocation4]  }
   0x6   : > { %s232_s11 = sshll.u32 %s1039_s10, 4  ;;  %s1040_s12 = smov [#allocation2]   ;;  %s233_s11 = int_to_ptr.vmem [resolvable:$true] %s232_s11 }
   0x7   : > { %p904_p4 = pneg %p1098_p3  ;;  %s215_s13 = sshll.u32 %s1040_s12, 4  ;;  %s216_s13 = int_to_ptr.vmem [resolvable:$true] %s215_s13 }
   0x8   : > { %s247_s16 = sshll.u32 %s1156_s5, 4  ;;  %s1041_s17 = smov 256   ;;  %s248_s16 = int_to_ptr.hbm [resolvable:$true] %s247_s16 }
   0x9   : > { %p905_p5 = pnand %p914_p2, %p904_p4  ;;  %s1042_s18 = smov 16  }
   0xa   : > { %s1043_s19 = smov [#allocation6]   ;;  %276 = sbr.rel (%p1098_p3) target bundleno = 459 (0x1cb), region = 48 }
   0xb   : > { %910 = dma.hbm_to_vmem [thread:$0]  (!%p905_p5), %s231_s28, 8192, %s233_s11, [#allocation5], %s1041_s17, %s1041_s17, %s1042_s18  }
   0xc   : > { %907 = dma.hbm_to_vmem [thread:$0]  (!%p905_p5), %s214_s9, 8192, %s216_s13, [#allocation3], %s1041_s17, %s1041_s17, %s1042_s18  }
   0xd   : > { %s249_s20 = sshll.u32 %s1043_s19, 4  ;;  %s250_s20 = int_to_ptr.vmem [resolvable:$true] %s249_s20 }
   0xe   : > { %913 = dma.hbm_to_vmem [thread:$0]  (!%p905_p5), %s248_s16, 8192, %s250_s20, [#allocation5], %s1041_s17, %s1041_s17, %s1042_s18  }
   0xf   : > { %1028 = dma.done.wait (%p914_p2), [#allocation3], 8192  }
  0x10   : > { %1030 = vsyncadd (%p914_p2), [#allocation3], 4294959104 }
  0x11   : > { %1032 = dma.done.wait (%p914_p2), [#allocation5], 16384  }
  0x12   : > { %1034 = vsyncadd (%p914_p2), [#allocation5], 4294950912  ;;  %v362_v0 = vld [vmem:[#allocation2 + $0xf8] sm:$0xff]  ;;  %v360_v1 = vld [vmem:[#allocation2 + $0xe8] sm:$0xff]  ;;  %p319_p6 = scmp.lt.s32.totalorder %s1090_s25, 1 }
  0x13   : > { %v394_v2 = vld [vmem:[#allocation2 + $0x1f8] sm:$0xff]  ;;  %441 = vmatpush.msra.mxu2 %v362_v0  ;;  %v361_v3 = vld [vmem:[#allocation2 + $0xf0] sm:$0xff]  ;;  %v392_v4 = vld [vmem:[#allocation2 + $0x1e8] sm:$0xff] }
  0x14   : > { %461 = vmatpush.msra.mxu3 %v394_v2  ;;  %401 = vmatpush.msra.mxu0 %v361_v3  ;;  %v358_v5 = vld [vmem:[#allocation2 + $0xd8] sm:$0xff]  ;;  %v359_v6 = vld [vmem:[#allocation2 + $0xe0] sm:$0xff]  ;;  %v393_v7 = vld [vmem:[#allocation2 + $0x1f0] sm:$0xff]  ;;  %s1161_s25 = smov (!%p319_p6, %s1090_s25), 1 }
  0x15   : > { %442 = vmatpush.msra.mxu2 %v360_v1  ;;  %v390_v8 = vld [vmem:[#allocation2 + $0x1d8] sm:$0xff]  ;;  %v357_v9 = vld [vmem:[#allocation2 + $0xd0] sm:$0xff]  ;;  %v391_v10 = vld [vmem:[#allocation2 + $0x1e0] sm:$0xff]  ;;  %421 = vmatpush.msra.mxu1 %v393_v7  ;;  %s890_s21 = sshll.u32 %s1161_s25, 4 }
  0x16   : > { %462 = vmatpush.msra.mxu3 %v392_v4  ;;  %402 = vmatpush.msra.mxu0 %v359_v6  ;;  %v356_v11 = vld [vmem:[#allocation2 + $0xc8] sm:$0xff]  ;;  %v355_v13 = vld [vmem:[#allocation2 + $0xc0] sm:$0xff]  ;;  %v389_v14 = vld [vmem:[#allocation2 + $0x1d0] sm:$0xff]  ;;  %s323_s26 = scalar_lea.vmem %s1151_s0, %s890_s21  ;;  %s328_s12 = scalar_lea.vmem %s1158_s7, %s890_s21 }
  0x17   : > { %v388_v12 = vld [vmem:[#allocation2 + $0x1c8] sm:$0xff]  ;;  %443 = vmatpush.msra.mxu2 %v358_v5  ;;  %422 = vmatpush.msra.mxu1 %v391_v10  ;;  %v354_v15 = vld [vmem:[#allocation2 + $0xb8] sm:$0xff]  ;;  %v353_v17 = vld [vmem:[#allocation2 + $0xb0] sm:$0xff] }
  0x18   : > { %463 = vmatpush.msra.mxu3 %v390_v8  ;;  %403 = vmatpush.msra.mxu0 %v357_v9  ;;  %v386_v16 = vld [vmem:[#allocation2 + $0x1b8] sm:$0xff]  ;;  %v387_v18 = vld [vmem:[#allocation2 + $0x1c0] sm:$0xff]  ;;  %v352_v19 = vld [vmem:[#allocation2 + $0xa8] sm:$0xff] }
  0x19   : > { %444 = vmatpush.msra.mxu2 %v356_v11  ;;  %423 = vmatpush.msra.mxu1 %v389_v14  ;;  %v384_v20 = vld [vmem:[#allocation2 + $0x1a8] sm:$0xff]  ;;  %v351_v21 = vld [vmem:[#allocation2 + $0xa0] sm:$0xff]  ;;  %v385_v22 = vld [vmem:[#allocation2 + $0x1b0] sm:$0xff] }
  0x1a   : > { %464 = vmatpush.msra.mxu3 %v388_v12  ;;  %404 = vmatpush.msra.mxu0 %v355_v13  ;;  %v350_v23 = vld [vmem:[#allocation2 + $0x98] sm:$0xff]  ;;  %v349_v25 = vld [vmem:[#allocation2 + $0x90] sm:$0xff]  ;;  %v383_v26 = vld [vmem:[#allocation2 + $0x1a0] sm:$0xff] }
  0x1b   : > { %445 = vmatpush.msra.mxu2 %v354_v15  ;;  %424 = vmatpush.msra.mxu1 %v387_v18  ;;  %v382_v24 = vld [vmem:[#allocation2 + $0x198] sm:$0xff]  ;;  %v348_v27 = vld [vmem:[#allocation2 + $0x88] sm:$0xff]  ;;  %v347_v29 = vld [vmem:[#allocation2 + $0x80] sm:$0xff] }
  0x1c   : > { %465 = vmatpush.msra.mxu3 %v386_v16  ;;  %405 = vmatpush.msra.mxu0 %v353_v17  ;;  %v380_v28 = vld [vmem:[#allocation2 + $0x188] sm:$0xff]  ;;  %v381_v30 = vld [vmem:[#allocation2 + $0x190] sm:$0xff]  ;;  %v346_v31 = vld [vmem:[#allocation2 + $0x78] sm:$0xff] }
  0x1d   : > { %446 = vmatpush.msra.mxu2 %v352_v19  ;;  %425 = vmatpush.msra.mxu1 %v385_v22  ;;  %v378_v32 = vld [vmem:[#allocation2 + $0x178] sm:$0xff]  ;;  %v345_v33 = vld [vmem:[#allocation2 + $0x70] sm:$0xff]  ;;  %v379_v34 = vld [vmem:[#allocation2 + $0x180] sm:$0xff] }
  0x1e   : > { %466 = vmatpush.msra.mxu3 %v384_v20  ;;  %406 = vmatpush.msra.mxu0 %v351_v21  ;;  %v344_v35 = vld [vmem:[#allocation2 + $0x68] sm:$0xff]  ;;  %v343_v37 = vld [vmem:[#allocation2 + $0x60] sm:$0xff]  ;;  %v377_v38 = vld [vmem:[#allocation2 + $0x170] sm:$0xff] }
  0x1f   : > { %447 = vmatpush.msra.mxu2 %v350_v23  ;;  %426 = vmatpush.msra.mxu1 %v383_v26  ;;  %v376_v36 = vld [vmem:[#allocation2 + $0x168] sm:$0xff]  ;;  %v342_v39 = vld [vmem:[#allocation2 + $0x58] sm:$0xff]  ;;  %v341_v41 = vld [vmem:[#allocation2 + $0x50] sm:$0xff] }
  0x20   : > { %467 = vmatpush.msra.mxu3 %v382_v24  ;;  %407 = vmatpush.msra.mxu0 %v349_v25  ;;  %v374_v40 = vld [vmem:[#allocation2 + $0x158] sm:$0xff]  ;;  %v375_v42 = vld [vmem:[#allocation2 + $0x160] sm:$0xff]  ;;  %v340_v43 = vld [vmem:[#allocation2 + $0x48] sm:$0xff] }
  0x21   : > { %448 = vmatpush.msra.mxu2 %v348_v27  ;;  %427 = vmatpush.msra.mxu1 %v381_v30  ;;  %v372_v44 = vld [vmem:[#allocation2 + $0x148] sm:$0xff]  ;;  %v339_v45 = vld [vmem:[#allocation2 + $0x40] sm:$0xff]  ;;  %v373_v46 = vld [vmem:[#allocation2 + $0x150] sm:$0xff] }
  0x22   : > { %468 = vmatpush.msra.mxu3 %v380_v28  ;;  %408 = vmatpush.msra.mxu0 %v347_v29  ;;  %v338_v47 = vld [vmem:[#allocation2 + $0x38] sm:$0xff]  ;;  %v337_v49 = vld [vmem:[#allocation2 + $0x30] sm:$0xff]  ;;  %v371_v50 = vld [vmem:[#allocation2 + $0x140] sm:$0xff] }
  0x23   : > { %449 = vmatpush.msra.mxu2 %v346_v31  ;;  %428 = vmatpush.msra.mxu1 %v379_v34  ;;  %v370_v48 = vld [vmem:[#allocation2 + $0x138] sm:$0xff]  ;;  %v336_v51 = vld [vmem:[#allocation2 + $0x28] sm:$0xff]  ;;  %v335_v53 = vld [vmem:[#allocation2 + $0x20] sm:$0xff] }
  0x24   : > { %469 = vmatpush.msra.mxu3 %v378_v32  ;;  %409 = vmatpush.msra.mxu0 %v345_v33  ;;  %v368_v52 = vld [vmem:[#allocation2 + $0x128] sm:$0xff]  ;;  %v369_v54 = vld [vmem:[#allocation2 + $0x130] sm:$0xff]  ;;  %v334_v55 = vld [vmem:[#allocation2 + $0x18] sm:$0xff] }
  0x25   : > { %450 = vmatpush.msra.mxu2 %v344_v35  ;;  %429 = vmatpush.msra.mxu1 %v377_v38  ;;  %v366_v56 = vld [vmem:[#allocation2 + $0x118] sm:$0xff]  ;;  %v333_v57 = vld [vmem:[#allocation2 + $0x10] sm:$0xff]  ;;  %v367_v58 = vld [vmem:[#allocation2 + $0x120] sm:$0xff] }
  0x26   : > { %470 = vmatpush.msra.mxu3 %v376_v36  ;;  %410 = vmatpush.msra.mxu0 %v343_v37  ;;  %v332_v59 = vld [vmem:[#allocation2 + $0x8] sm:$0xff]  ;;  %v329_v61 = vld [vmem:[%s323_s26] sm:$0xff]  ;;  %v365_v0 = vld [vmem:[#allocation2 + $0x110] sm:$0xff] }
  0x27   : > { %451 = vmatpush.msra.mxu2 %v342_v39  ;;  %430 = vmatpush.msra.mxu1 %v375_v42  ;;  %v364_v60 = vld [vmem:[#allocation2 + $0x108] sm:$0xff]  ;;  %v331_v63 = vld [vmem:[#allocation2] sm:$0xff]  ;;  %v514_v1 = vld [vmem:[#allocation4 + $0xf8] sm:$0xff] }
  0x28   : > { %471 = vmatpush.msra.mxu3 %v374_v40  ;;  %411 = vmatpush.msra.mxu0 %v341_v41  ;;  %v330_v62 = vld [vmem:[%s323_s26 + $0x8] sm:$0xff]  ;;  %v363_v2 = vld [vmem:[#allocation2 + $0x100] sm:$0xff]  ;;  %v513_v3 = vld [vmem:[#allocation4 + $0xf0] sm:$0xff] }
  0x29   : > { %452 = vmatpush.msra.mxu2 %v340_v43  ;;  %431 = vmatpush.msra.mxu1 %v373_v46  ;;  %v512_v4 = vld [vmem:[#allocation4 + $0xe8] sm:$0xff]  ;;  %v511_v5 = vld [vmem:[#allocation4 + $0xe0] sm:$0xff]  ;;  %v545_v6 = vld [vmem:[#allocation4 + $0x1f0] sm:$0xff] }
  0x2a   : > { %472 = vmatpush.msra.mxu3 %v372_v44  ;;  %412 = vmatpush.msra.mxu0 %v339_v45  ;;  %v546_v7 = vld [vmem:[#allocation4 + $0x1f8] sm:$0xff]  ;;  %v509_v9 = vld [vmem:[#allocation4 + $0xd0] sm:$0xff]  ;;  %v543_v10 = vld [vmem:[#allocation4 + $0x1e0] sm:$0xff] }
  0x2b   : > { %453 = vmatpush.msra.mxu2 %v338_v47  ;;  %432 = vmatpush.msra.mxu1 %v371_v50  ;;  %v510_v8 = vld [vmem:[#allocation4 + $0xd8] sm:$0xff]  ;;  %v544_v11 = vld [vmem:[#allocation4 + $0x1e8] sm:$0xff]  ;;  %v507_v13 = vld [vmem:[#allocation4 + $0xc0] sm:$0xff] }
  0x2c   : > { %473 = vmatpush.msra.mxu3 %v370_v48  ;;  %413 = vmatpush.msra.mxu0 %v337_v49  ;;  %v508_v12 = vld [vmem:[#allocation4 + $0xc8] sm:$0xff]  ;;  %v541_v14 = vld [vmem:[#allocation4 + $0x1d0] sm:$0xff]  ;;  %v542_v15 = vld [vmem:[#allocation4 + $0x1d8] sm:$0xff] }
  0x2d   : > { %454 = vmatpush.msra.mxu2 %v336_v51  ;;  %433 = vmatpush.msra.mxu1 %v369_v54  ;;  %v506_v16 = vld [vmem:[#allocation4 + $0xb8] sm:$0xff]  ;;  %v505_v17 = vld [vmem:[#allocation4 + $0xb0] sm:$0xff]  ;;  %v539_v18 = vld [vmem:[#allocation4 + $0x1c0] sm:$0xff] }
  0x2e   : > { %474 = vmatpush.msra.mxu3 %v368_v52  ;;  %414 = vmatpush.msra.mxu0 %v335_v53  ;;  %v540_v19 = vld [vmem:[#allocation4 + $0x1c8] sm:$0xff]  ;;  %v503_v21 = vld [vmem:[#allocation4 + $0xa0] sm:$0xff]  ;;  %v537_v22 = vld [vmem:[#allocation4 + $0x1b0] sm:$0xff] }
  0x2f   : > { %455 = vmatpush.msra.mxu2 %v334_v55  ;;  %434 = vmatpush.msra.mxu1 %v367_v58  ;;  %v504_v20 = vld [vmem:[#allocation4 + $0xa8] sm:$0xff]  ;;  %v538_v23 = vld [vmem:[#allocation4 + $0x1b8] sm:$0xff]  ;;  %v501_v25 = vld [vmem:[#allocation4 + $0x90] sm:$0xff] }
  0x30   : > { %475 = vmatpush.msra.mxu3 %v366_v56  ;;  %415 = vmatpush.msra.mxu0 %v333_v57  ;;  %v502_v24 = vld [vmem:[#allocation4 + $0x98] sm:$0xff]  ;;  %v535_v26 = vld [vmem:[#allocation4 + $0x1a0] sm:$0xff]  ;;  %v536_v27 = vld [vmem:[#allocation4 + $0x1a8] sm:$0xff] }
  0x31   : > { %456 = vmatpush.msra.mxu2 %v332_v59  ;;  %435 = vmatpush.msra.mxu1 %v365_v0  ;;  %v500_v28 = vld [vmem:[#allocation4 + $0x88] sm:$0xff]  ;;  %v499_v29 = vld [vmem:[#allocation4 + $0x80] sm:$0xff]  ;;  %v533_v30 = vld [vmem:[#allocation4 + $0x190] sm:$0xff] }
  0x32   : > { %476 = vmatpush.msra.mxu3 %v364_v60  ;;  %457 = vmatmul.f32.vlgmr.msra.gmra.mxu2 %v329_v61  ;;  %v534_v31 = vld [vmem:[#allocation4 + $0x198] sm:$0xff]  ;;  %v497_v33 = vld [vmem:[#allocation4 + $0x70] sm:$0xff]  ;;  %v531_v34 = vld [vmem:[#allocation4 + $0x180] sm:$0xff] }
  0x33   : > { %477 = vmatmul.f32.vlgmr.msra.gmra.mxu3 %v330_v62  ;;  %416 = vmatpush.msra.mxu0 %v331_v63  ;;  %v498_v32 = vld [vmem:[#allocation4 + $0x78] sm:$0xff]  ;;  %v532_v35 = vld [vmem:[#allocation4 + $0x188] sm:$0xff]  ;;  %v495_v37 = vld [vmem:[#allocation4 + $0x60] sm:$0xff] }
  0x34   : > { %417 = vmatmul.f32.vlgmr.msra.gmra.mxu0 %v329_v61  ;;  %593 = vmatpush.msrb.mxu2 %v514_v1  ;;  %v496_v36 = vld [vmem:[#allocation4 + $0x68] sm:$0xff]  ;;  %v529_v38 = vld [vmem:[#allocation4 + $0x170] sm:$0xff]  ;;  %v530_v39 = vld [vmem:[#allocation4 + $0x178] sm:$0xff] }
  0x35   : > { %436 = vmatpush.msra.mxu1 %v363_v2  ;;  %553 = vmatpush.msrb.mxu0 %v513_v3  ;;  %v494_v40 = vld [vmem:[#allocation4 + $0x58] sm:$0xff]  ;;  %v493_v41 = vld [vmem:[#allocation4 + $0x50] sm:$0xff]  ;;  %v527_v42 = vld [vmem:[#allocation4 + $0x160] sm:$0xff] }
  0x36   : > { %437 = vmatmul.f32.vlgmr.msra.gmra.mxu1 %v330_v62  ;;  %594 = vmatpush.msrb.mxu2 %v512_v4  ;;  %v528_v43 = vld [vmem:[#allocation4 + $0x168] sm:$0xff]  ;;  %v491_v45 = vld [vmem:[#allocation4 + $0x40] sm:$0xff]  ;;  %v525_v46 = vld [vmem:[#allocation4 + $0x150] sm:$0xff] }
  0x37   : > { %554 = vmatpush.msrb.mxu0 %v511_v5  ;;  %573 = vmatpush.msrb.mxu1 %v545_v6  ;;  %v492_v44 = vld [vmem:[#allocation4 + $0x48] sm:$0xff]  ;;  %v526_v47 = vld [vmem:[#allocation4 + $0x158] sm:$0xff]  ;;  %v489_v48 = vld [vmem:[#allocation4 + $0x30] sm:$0xff] }
  0x38   : > { %613 = vmatpush.msrb.mxu3 %v546_v7  ;;  %595 = vmatpush.msrb.mxu2 %v510_v8  ;;  %v523_v49 = vld [vmem:[#allocation4 + $0x140] sm:$0xff]  ;;  %v490_v50 = vld [vmem:[#allocation4 + $0x38] sm:$0xff]  ;;  %v524_v51 = vld [vmem:[#allocation4 + $0x148] sm:$0xff] }
  0x39   : > { %555 = vmatpush.msrb.mxu0 %v509_v9  ;;  %574 = vmatpush.msrb.mxu1 %v543_v10  ;;  %v487_v52 = vld [vmem:[#allocation4 + $0x20] sm:$0xff]  ;;  %v521_v53 = vld [vmem:[#allocation4 + $0x130] sm:$0xff]  ;;  %v488_v54 = vld [vmem:[#allocation4 + $0x28] sm:$0xff] }
  0x3a   : > { %614 = vmatpush.msrb.mxu3 %v544_v11  ;;  %596 = vmatpush.msrb.mxu2 %v508_v12  ;;  %v522_v55 = vld [vmem:[#allocation4 + $0x138] sm:$0xff]  ;;  %v485_v56 = vld [vmem:[#allocation4 + $0x10] sm:$0xff]  ;;  %v519_v57 = vld [vmem:[#allocation4 + $0x120] sm:$0xff] }
  0x3b   : > { %556 = vmatpush.msrb.mxu0 %v507_v13  ;;  %575 = vmatpush.msrb.mxu1 %v541_v14  ;;  %v486_v58 = vld [vmem:[#allocation4 + $0x18] sm:$0xff]  ;;  %v520_v59 = vld [vmem:[#allocation4 + $0x128] sm:$0xff]  ;;  %v483_v60 = vld [vmem:[#allocation4] sm:$0xff] }
  0x3c   : > { %615 = vmatpush.msrb.mxu3 %v542_v15  ;;  %597 = vmatpush.msrb.mxu2 %v506_v16  ;;  %v517_v61 = vld [vmem:[#allocation4 + $0x110] sm:$0xff]  ;;  %v484_v62 = vld [vmem:[#allocation4 + $0x8] sm:$0xff]  ;;  %v518_v63 = vld [vmem:[#allocation4 + $0x118] sm:$0xff] }
  0x3d   : > { %557 = vmatpush.msrb.mxu0 %v505_v17  ;;  %576 = vmatpush.msrb.mxu1 %v539_v18  ;;  %v515_v0 = vld [vmem:[#allocation4 + $0x100] sm:$0xff]  ;;  %v516_v1 = vld [vmem:[#allocation4 + $0x108] sm:$0xff]  ;;  %v665_v2 = vld [vmem:[#allocation6 + $0xf0] sm:$0xff] }
  0x3e   : > { %616 = vmatpush.msrb.mxu3 %v540_v19  ;;  %598 = vmatpush.msrb.mxu2 %v504_v20  ;;  %v666_v3 = vld [vmem:[#allocation6 + $0xf8] sm:$0xff]  ;;  %v663_v4 = vld [vmem:[#allocation6 + $0xe0] sm:$0xff]  ;;  %v664_v5 = vld [vmem:[#allocation6 + $0xe8] sm:$0xff] }
  0x3f   : > { %558 = vmatpush.msrb.mxu0 %v503_v21  ;;  %577 = vmatpush.msrb.mxu1 %v537_v22  ;;  %v661_v6 = vld [vmem:[#allocation6 + $0xd0] sm:$0xff]  ;;  %v662_v7 = vld [vmem:[#allocation6 + $0xd8] sm:$0xff]  ;;  %v695_v10 = vld [vmem:[#allocation6 + $0x1e0] sm:$0xff] }
  0x40   : > { %617 = vmatpush.msrb.mxu3 %v538_v23  ;;  %599 = vmatpush.msrb.mxu2 %v502_v24  ;;  %v697_v8 = vld [vmem:[#allocation6 + $0x1f0] sm:$0xff]  ;;  %v698_v9 = vld [vmem:[#allocation6 + $0x1f8] sm:$0xff]  ;;  %v659_v11 = vld [vmem:[#allocation6 + $0xc0] sm:$0xff] }
  0x41   : > { %559 = vmatpush.msrb.mxu0 %v501_v25  ;;  %578 = vmatpush.msrb.mxu1 %v535_v26  ;;  %v660_v12 = vld [vmem:[#allocation6 + $0xc8] sm:$0xff]  ;;  %v693_v14 = vld [vmem:[#allocation6 + $0x1d0] sm:$0xff]  ;;  %v694_v15 = vld [vmem:[#allocation6 + $0x1d8] sm:$0xff] }
  0x42   : > { %618 = vmatpush.msrb.mxu3 %v536_v27  ;;  %600 = vmatpush.msrb.mxu2 %v500_v28  ;;  %v696_v13 = vld [vmem:[#allocation6 + $0x1e8] sm:$0xff]  ;;  %v657_v16 = vld [vmem:[#allocation6 + $0xb0] sm:$0xff]  ;;  %v658_v17 = vld [vmem:[#allocation6 + $0xb8] sm:$0xff] }
  0x43   : > { %560 = vmatpush.msrb.mxu0 %v499_v29  ;;  %579 = vmatpush.msrb.mxu1 %v533_v30  ;;  %v691_v18 = vld [vmem:[#allocation6 + $0x1c0] sm:$0xff]  ;;  %v692_v19 = vld [vmem:[#allocation6 + $0x1c8] sm:$0xff]  ;;  %v689_v22 = vld [vmem:[#allocation6 + $0x1b0] sm:$0xff] }
  0x44   : > { %619 = vmatpush.msrb.mxu3 %v534_v31  ;;  %601 = vmatpush.msrb.mxu2 %v498_v32  ;;  %v655_v20 = vld [vmem:[#allocation6 + $0xa0] sm:$0xff]  ;;  %v656_v21 = vld [vmem:[#allocation6 + $0xa8] sm:$0xff]  ;;  %v690_v23 = vld [vmem:[#allocation6 + $0x1b8] sm:$0xff] }
  0x45   : > { %561 = vmatpush.msrb.mxu0 %v497_v33  ;;  %580 = vmatpush.msrb.mxu1 %v531_v34  ;;  %v653_v24 = vld [vmem:[#allocation6 + $0x90] sm:$0xff]  ;;  %v654_v25 = vld [vmem:[#allocation6 + $0x98] sm:$0xff]  ;;  %v687_v26 = vld [vmem:[#allocation6 + $0x1a0] sm:$0xff] }
  0x46   : > { %620 = vmatpush.msrb.mxu3 %v532_v35  ;;  %602 = vmatpush.msrb.mxu2 %v496_v36  ;;  %v688_v27 = vld [vmem:[#allocation6 + $0x1a8] sm:$0xff]  ;;  %v651_v28 = vld [vmem:[#allocation6 + $0x80] sm:$0xff]  ;;  %v685_v30 = vld [vmem:[#allocation6 + $0x190] sm:$0xff] }
  0x47   : > { %562 = vmatpush.msrb.mxu0 %v495_v37  ;;  %581 = vmatpush.msrb.mxu1 %v529_v38  ;;  %v652_v29 = vld [vmem:[#allocation6 + $0x88] sm:$0xff]  ;;  %v686_v31 = vld [vmem:[#allocation6 + $0x198] sm:$0xff]  ;;  %v649_v32 = vld [vmem:[#allocation6 + $0x70] sm:$0xff] }
  0x48   : > { %621 = vmatpush.msrb.mxu3 %v530_v39  ;;  %603 = vmatpush.msrb.mxu2 %v494_v40  ;;  %v650_v33 = vld [vmem:[#allocation6 + $0x78] sm:$0xff]  ;;  %v395_v34 = vld [vmem:[%s1153_s2] sm:$0x3]  ;;  %v684_v36 = vld [vmem:[#allocation6 + $0x188] sm:$0xff] }
  0x49   : > { %563 = vmatpush.msrb.mxu0 %v493_v41  ;;  %582 = vmatpush.msrb.mxu1 %v527_v42  ;;  %v683_v35 = vld [vmem:[#allocation6 + $0x180] sm:$0xff]  ;;  %v648_v38 = vld [vmem:[#allocation6 + $0x68] sm:$0xff]  ;;  %v681_v39 = vld [vmem:[#allocation6 + $0x170] sm:$0xff]  ;;  %v397_v41 = vperm.slane %v395_v34, 0 }
  0x4a   : > { %622 = vmatpush.msrb.mxu3 %v528_v43  ;;  %604 = vmatpush.msrb.mxu2 %v492_v44  ;;  %v647_v37 = vld [vmem:[#allocation6 + $0x60] sm:$0xff]  ;;  %v682_v40 = vld [vmem:[#allocation6 + $0x178] sm:$0xff]  ;;  %v645_v42 = vld [vmem:[#allocation6 + $0x50] sm:$0xff] }
  0x4b   : > { %564 = vmatpush.msrb.mxu0 %v491_v45  ;;  %583 = vmatpush.msrb.mxu1 %v525_v46  ;;  %v646_v43 = vld [vmem:[#allocation6 + $0x58] sm:$0xff]  ;;  %v643_v44 = vld [vmem:[#allocation6 + $0x40] sm:$0xff]  ;;  %v644_v45 = vld [vmem:[#allocation6 + $0x48] sm:$0xff] }
  0x4c   : > { %623 = vmatpush.msrb.mxu3 %v526_v47  ;;  %605 = vmatpush.msrb.mxu2 %v490_v50 }
  0x4d   : > { %565 = vmatpush.msrb.mxu0 %v489_v48  ;;  %584 = vmatpush.msrb.mxu1 %v523_v49  ;;  %v398_v48 = vperm.slane %v395_v34, 1 }
  0x4e   : > { %624 = vmatpush.msrb.mxu3 %v524_v51  ;;  %606 = vmatpush.msrb.mxu2 %v488_v54 }
  0x4f   : > { %566 = vmatpush.msrb.mxu0 %v487_v52  ;;  %585 = vmatpush.msrb.mxu1 %v521_v53 }
  0x50   : > { %625 = vmatpush.msrb.mxu3 %v522_v55  ;;  %607 = vmatpush.msrb.mxu2 %v486_v58  ;;  %v679_v58 = vld [vmem:[#allocation6 + $0x160] sm:$0xff] }
  0x51   : > { %567 = vmatpush.msrb.mxu0 %v485_v56  ;;  %586 = vmatpush.msrb.mxu1 %v519_v57  ;;  %v641_v57 = vld [vmem:[#allocation6 + $0x30] sm:$0xff] }
  0x52   : > { %626 = vmatpush.msrb.mxu3 %v520_v59  ;;  %608 = vmatpush.msrb.mxu2 %v484_v62  ;;  %v642_v59 = vld [vmem:[#allocation6 + $0x38] sm:$0xff]  ;;  %v677_v62 = vld [vmem:[#allocation6 + $0x150] sm:$0xff] }
  0x53   : > { %568 = vmatpush.msrb.mxu0 %v483_v60  ;;  %587 = vmatpush.msrb.mxu1 %v517_v61  ;;  %v680_v60 = vld [vmem:[#allocation6 + $0x168] sm:$0xff]  ;;  %v639_v61 = vld [vmem:[#allocation6 + $0x20] sm:$0xff] }
  0x54   : > { %627 = vmatpush.msrb.mxu3 %v518_v63  ;;  %745 = vmatpush.msra.mxu2 %v666_v3  ;;  %v640_v63 = vld [vmem:[#allocation6 + $0x28] sm:$0xff]  ;;  %v638_v3 = vld [vmem:[#allocation6 + $0x18] sm:$0xff] }
  0x55   : > { %588 = vmatpush.msrb.mxu1 %v515_v0  ;;  %705 = vmatpush.msra.mxu0 %v665_v2  ;;  %v678_v0 = vld [vmem:[#allocation6 + $0x158] sm:$0xff]  ;;  %v675_v2 = vld [vmem:[#allocation6 + $0x140] sm:$0xff] }
  0x56   : > { %628 = vmatpush.msrb.mxu3 %v516_v1  ;;  %746 = vmatpush.msra.mxu2 %v664_v5  ;;  %v637_v1 = vld [vmem:[#allocation6 + $0x10] sm:$0xff]  ;;  %v635_v5 = vld [vmem:[#allocation6] sm:$0xff] }
  0x57   : > { %706 = vmatpush.msra.mxu0 %v663_v4  ;;  %725 = vmatpush.msra.mxu1 %v697_v8  ;;  %v676_v4 = vld [vmem:[#allocation6 + $0x148] sm:$0xff]  ;;  %v674_v8 = vld [vmem:[#allocation6 + $0x138] sm:$0xff] }
  0x58   : > { %765 = vmatpush.msra.mxu3 %v698_v9  ;;  %747 = vmatpush.msra.mxu2 %v662_v7  ;;  %v636_v7 = vld [vmem:[#allocation6 + $0x8] sm:$0xff]  ;;  %v671_v9 = vld [vmem:[#allocation6 + $0x120] sm:$0xff] }
  0x59   : > { %707 = vmatpush.msra.mxu0 %v661_v6  ;;  %726 = vmatpush.msra.mxu1 %v695_v10  ;;  %v673_v6 = vld [vmem:[#allocation6 + $0x130] sm:$0xff]  ;;  %v672_v10 = vld [vmem:[#allocation6 + $0x128] sm:$0xff] }
  0x5a   : > { %766 = vmatpush.msra.mxu3 %v696_v13  ;;  %748 = vmatpush.msra.mxu2 %v660_v12  ;;  %v670_v12 = vld [vmem:[#allocation6 + $0x118] sm:$0xff]  ;;  %v667_v13 = vld [vmem:[#allocation6 + $0x100] sm:$0xff] }
  0x5b   : > { %708 = vmatpush.msra.mxu0 %v659_v11  ;;  %727 = vmatpush.msra.mxu1 %v693_v14  ;;  %v669_v11 = vld [vmem:[#allocation6 + $0x110] sm:$0xff]  ;;  %v668_v14 = vld [vmem:[#allocation6 + $0x108] sm:$0xff] }
  0x5c   : > { %767 = vmatpush.msra.mxu3 %v694_v15  ;;  %749 = vmatpush.msra.mxu2 %v658_v17  ;;  %v547_v15 = vld [vmem:[%s1155_s4] sm:$0x3] }
  0x5d   : > { %709 = vmatpush.msra.mxu0 %v657_v16  ;;  %728 = vmatpush.msra.mxu1 %v691_v18  ;;  %v549_v16 = vperm.slane %v547_v15, 0 }
  0x5e   : > { %768 = vmatpush.msra.mxu3 %v692_v19  ;;  %750 = vmatpush.msra.mxu2 %v656_v21  ;;  %v550_v19 = vperm.slane %v547_v15, 1 }
  0x5f   : > { %710 = vmatpush.msra.mxu0 %v655_v20  ;;  %729 = vmatpush.msra.mxu1 %v689_v22 }
  0x60   : > { %769 = vmatpush.msra.mxu3 %v690_v23  ;;  %751 = vmatpush.msra.mxu2 %v654_v25 }
  0x61   : > { %711 = vmatpush.msra.mxu0 %v653_v24  ;;  %730 = vmatpush.msra.mxu1 %v687_v26 }
  0x62   : > { %770 = vmatpush.msra.mxu3 %v688_v27  ;;  %752 = vmatpush.msra.mxu2 %v652_v29 }
  0x63   : > { %712 = vmatpush.msra.mxu0 %v651_v28  ;;  %731 = vmatpush.msra.mxu1 %v685_v30  ;;  %v699_v28 = vld [vmem:[%s1157_s6] sm:$0x3] }
  0x64   : > { %771 = vmatpush.msra.mxu3 %v686_v31  ;;  %753 = vmatpush.msra.mxu2 %v650_v33  ;;  %v701_v29 = vperm.slane %v699_v28, 0  ;;  %v702_v34 = vperm.slane %v699_v28, 1 }
  0x65   : > { %713 = vmatpush.msra.mxu0 %v649_v32  ;;  %732 = vmatpush.msra.mxu1 %v683_v35 }
  0x66   : > { %772 = vmatpush.msra.mxu3 %v684_v36  ;;  %754 = vmatpush.msra.mxu2 %v648_v38 }
  0x67   : > { %714 = vmatpush.msra.mxu0 %v647_v37  ;;  %733 = vmatpush.msra.mxu1 %v681_v39 }
  0x68   : > { %773 = vmatpush.msra.mxu3 %v682_v40  ;;  %755 = vmatpush.msra.mxu2 %v646_v43 }
  0x69   : > { %715 = vmatpush.msra.mxu0 %v645_v42  ;;  %734 = vmatpush.msra.mxu1 %v679_v58 }
  0x6a   : > { %756 = vmatpush.msra.mxu2 %v644_v45  ;;  %774 = vmatpush.msra.mxu3 %v680_v60 }
  0x6b   : > { %716 = vmatpush.msra.mxu0 %v643_v44  ;;  %735 = vmatpush.msra.mxu1 %v677_v62 }
  0x6c   : > { %757 = vmatpush.msra.mxu2 %v642_v59  ;;  %775 = vmatpush.msra.mxu3 %v678_v0 }
  0x6d   : > { %717 = vmatpush.msra.mxu0 %v641_v57  ;;  %736 = vmatpush.msra.mxu1 %v675_v2 }
  0x6e   : > { %758 = vmatpush.msra.mxu2 %v640_v63  ;;  %776 = vmatpush.msra.mxu3 %v676_v4 }
  0x6f   : > { %718 = vmatpush.msra.mxu0 %v639_v61  ;;  %737 = vmatpush.msra.mxu1 %v673_v6 }
  0x70   : > { %759 = vmatpush.msra.mxu2 %v638_v3  ;;  %777 = vmatpush.msra.mxu3 %v674_v8 }
  0x71   : > { %719 = vmatpush.msra.mxu0 %v637_v1  ;;  %738 = vmatpush.msra.mxu1 %v671_v9 }
  0x72   : > { %760 = vmatpush.msra.mxu2 %v636_v7  ;;  %778 = vmatpush.msra.mxu3 %v672_v10 }
  0x73   : > { %720 = vmatpush.msra.mxu0 %v635_v5  ;;  %739 = vmatpush.msra.mxu1 %v669_v11 }
  0x74   : > { %779 = vmatpush.msra.mxu3 %v670_v12 }
  0x75   : > { %740 = vmatpush.msra.mxu1 %v667_v13 }
  0x76   : > { %780 = vmatpush.msra.mxu3 %v668_v14 }
  0xb1   : > { %v418_v46 = vpop.f32.mrf.mxu0 }
  0xb2   : > { %v419_v47 = vadd.f32 %v418_v46, %v397_v41 }
  0xb3   : > { %v438_v49 = vpop.f32.mrf.mxu1 }
  0xb4   : > { %v439_v50 = vadd.f32 %v438_v49, %v419_v47 }
  0xb5   : > { %v458_v51 = vpop.f32.mrf.mxu2 }
  0xb6   : > { %v478_v52 = vpop.f32.mrf.mxu3  ;;  %v481_v53 = vmax.f32 %v439_v50, 0.0  ;;  %v459_v54 = vadd.f32 %v458_v51, %v398_v48 }
  0xb8   : > { %v479_v55 = vadd.f32 %v478_v52, %v459_v54  ;;  %569 = vmatmul.f32.vlgmr.msrb.gmra.mxu0 %v481_v53  ;;  %609 = vmatmul.f32.vlgmr.msrb.gmra.mxu2 %v481_v53 }
  0xba   : > { %v482_v56 = vmax.f32 %v479_v55, 0.0 }
  0xbc   : > { %589 = vmatmul.f32.vlgmr.msrb.gmra.mxu1 %v482_v56  ;;  %629 = vmatmul.f32.vlgmr.msrb.gmra.mxu3 %v482_v56 }
 0x135   : > { %v570_v17 = vpop.f32.mrf.mxu0 }
 0x136   : > { %v571_v18 = vadd.f32 %v570_v17, %v549_v16 }
 0x139   : > { %v590_v20 = vpop.f32.mrf.mxu1 }
 0x13a   : > { %v591_v21 = vadd.f32 %v590_v20, %v571_v18 }
 0x13b   : > { %v610_v22 = vpop.f32.mrf.mxu2 }
 0x13c   : > { %v633_v23 = vmax.f32 %v591_v21, 0.0  ;;  %v611_v24 = vadd.f32 %v610_v22, %v550_v19 }
 0x13e   : > { %721 = vmatmul.f32.vlgmr.msra.gmra.mxu0 %v633_v23  ;;  %761 = vmatmul.f32.vlgmr.msra.gmra.mxu2 %v633_v23 }
 0x13f   : > { %v630_v25 = vpop.f32.mrf.mxu3 }
 0x140   : > { %v631_v26 = vadd.f32 %v630_v25, %v611_v24 }
 0x142   : > { %v634_v27 = vmax.f32 %v631_v26, 0.0 }
 0x144   : > { %741 = vmatmul.f32.vlgmr.msra.gmra.mxu1 %v634_v27  ;;  %781 = vmatmul.f32.vlgmr.msra.gmra.mxu3 %v634_v27 }
 0x1bb   : > { %v722_v30 = vpop.f32.mrf.mxu0 }
 0x1bc   : > { %v723_v31 = vadd.f32 %v722_v30, %v701_v29 }
 0x1c1   : > { %v742_v32 = vpop.f32.mrf.mxu1  ;;  %v762_v35 = vpop.f32.mrf.mxu2 }
 0x1c2   : > { %v743_v33 = vadd.f32 %v742_v32, %v723_v31  ;;  %v763_v36 = vadd.f32 %v762_v35, %v702_v34 }
 0x1c4   : > { %785 = vst [vmem:[%s328_s12] sm:$0xff] %v743_v33 }
 0x1c7   : > { %v782_v37 = vpop.f32.mrf.mxu3 }
 0x1c8   : > { %v783_v38 = vadd.f32 %v782_v37, %v763_v36 }
 0x1ca   : > { %786 = vst [vmem:[%s328_s12 + $0x8] sm:$0xff] %v783_v38 }
 0x1cb PF: > { %s19_s24 = sadd.s32 1, %s1037_s24  }
 0x1cc   : > { %p16_p7 = scmp.ge.s32.totalorder %s19_s24, 4  }
 0x1ce   :  { %18 = sbr.rel (!%p16_p7) target bundleno = 2 (0x2), region = 91 }
 0x1d3   :  { %808 = vsyncpa [#allocation3], 1 }
 0x1d4   :  { %810 = vsyncpa [#allocation3 + $0x1], 1 }
 0x1d5   :  { %811 = vsyncpa [#allocation5], 1 }

// kernel: mlp_forward.1
= control target key start
LH: loop header
LB: loop body
LE: loop exit
PB: predicated region body
PF: predicated region fallthrough
CT: control target
= control target key end

     0   :  { %12 = vsyncpa [#allocation3], 0  ;;  %s1151_s0 = inlined_call_operand.vmem [shape: f32[16,256], index: 0, kind: input, shape index: {}]   ;;  %s1152_s1 = inlined_call_operand.hbm [shape: f32[256,256], index: 1, kind: input, shape index: {}]   ;;  %s1153_s2 = inlined_call_operand.vmem [shape: f32[1,256], index: 2, kind: input, shape index: {}]   ;;  %s1154_s3 = inlined_call_operand.hbm [shape: f32[256,256], index: 3, kind: input, shape index: {}]   ;;  %s1155_s4 = inlined_call_operand.vmem [shape: f32[1,256], index: 4, kind: input, shape index: {}]   ;;  %s1156_s5 = inlined_call_operand.hbm [shape: f32[256,256], index: 5, kind: input, shape index: {}]   ;;  %s1157_s6 = inlined_call_operand.vmem [shape: f32[1,256], index: 6, kind: input, shape index: {}]   ;;  %s1158_s7 = inlined_call_operand.vmem [shape: f32[16,256], index: 7, kind: output, shape index: {}]  }
   0x1   :  { %13 = vsyncpa [#allocation5], 0  ;;  %s1084_s24 = smov 0  }
   0x2 LB: > { %s1090_s25 = sadd.s32 4294967295, %s1037_s24   ;;  %p875_p0 = scmp.ge.s32.totalorder %s1037_s24, 1  ;;  %s1037_s24 = sphi %s1084_s24, %s19_s24  }
   0x3   : > { %p202_p1 = scmp.lt.s32.totalorder %s1037_s24, 3  ;;  %p914_p2 = scmp.eq.s32.totalorder %s1090_s25, 0 }
   0x4   : > { %s230_s28 = sshll.u32 %s1154_s3, 4  ;;  %s213_s9 = sshll.u32 %s1152_s1, 4  ;;  %s231_s28 = int_to_ptr.hbm [resolvable:$true] %s230_s28  ;;  %s214_s9 = int_to_ptr.hbm [resolvable:$true] %s213_s9 }
   0x5   : > { %p1098_p3 = pnand %p875_p0, %p202_p1  ;;  %s1039_s10 = smov [#allocation4]  }
   0x6   : > { %s232_s11 = sshll.u32 %s1039_s10, 4  ;;  %s1040_s12 = smov [#allocation2]   ;;  %s233_s11 = int_to_ptr.vmem [resolvable:$true] %s232_s11 }
   0x7   : > { %p904_p4 = pneg %p1098_p3  ;;  %s215_s13 = sshll.u32 %s1040_s12, 4  ;;  %s216_s13 = int_to_ptr.vmem [resolvable:$true] %s215_s13 }
   0x8   : > { %s247_s16 = sshll.u32 %s1156_s5, 4  ;;  %s1041_s17 = smov 256   ;;  %s248_s16 = int_to_ptr.hbm [resolvable:$true] %s247_s16 }
   0x9   : > { %p905_p5 = pnand %p914_p2, %p904_p4  ;;  %s1042_s18 = smov 16  }
   0xa   : > { %s1043_s19 = smov [#allocation6]   ;;  %276 = sbr.rel (%p1098_p3) target bundleno = 459 (0x1cb), region = 48 }
   0xb   : > { %910 = dma.hbm_to_vmem [thread:$0]  (!%p905_p5), %s231_s28, 8192, %s233_s11, [#allocation5], %s1041_s17, %s1041_s17, %s1042_s18  }
   0xc   : > { %907 = dma.hbm_to_vmem [thread:$0]  (!%p905_p5), %s214_s9, 8192, %s216_s13, [#allocation3], %s1041_s17, %s1041_s17, %s1042_s18  }
   0xd   : > { %s249_s20 = sshll.u32 %s1043_s19, 4  ;;  %s250_s20 = int_to_ptr.vmem [resolvable:$true] %s249_s20 }
   0xe   : > { %913 = dma.hbm_to_vmem [thread:$0]  (!%p905_p5), %s248_s16, 8192, %s250_s20, [#allocation5], %s1041_s17, %s1041_s17, %s1042_s18  }
   0xf   : > { %1028 = dma.done.wait (%p914_p2), [#allocation3], 8192  }
  0x10   : > { %1030 = vsyncadd (%p914_p2), [#allocation3], 4294959104 }
  0x11   : > { %1032 = dma.done.wait (%p914_p2), [#allocation5], 16384  }
  0x12   : > { %1034 = vsyncadd (%p914_p2), [#allocation5], 4294950912  ;;  %v362_v0 = vld [vmem:[#allocation2 + $0xf8] sm:$0xff]  ;;  %v360_v1 = vld [vmem:[#allocation2 + $0xe8] sm:$0xff]  ;;  %p319_p6 = scmp.lt.s32.totalorder %s1090_s25, 1 }
  0x13   : > { %v394_v2 = vld [vmem:[#allocation2 + $0x1f8] sm:$0xff]  ;;  %441 = vmatpush.msra.mxu2 %v362_v0  ;;  %v361_v3 = vld [vmem:[#allocation2 + $0xf0] sm:$0xff]  ;;  %v392_v4 = vld [vmem:[#allocation2 + $0x1e8] sm:$0xff] }
  0x14   : > { %461 = vmatpush.msra.mxu3 %v394_v2  ;;  %401 = vmatpush.msra.mxu0 %v361_v3  ;;  %v358_v5 = vld [vmem:[#allocation2 + $0xd8] sm:$0xff]  ;;  %v359_v6 = vld [vmem:[#allocation2 + $0xe0] sm:$0xff]  ;;  %v393_v7 = vld [vmem:[#allocation2 + $0x1f0] sm:$0xff]  ;;  %s1161_s25 = smov (!%p319_p6, %s1090_s25), 1 }
  0x15   : > { %442 = vmatpush.msra.mxu2 %v360_v1  ;;  %v390_v8 = vld [vmem:[#allocation2 + $0x1d8] sm:$0xff]  ;;  %v357_v9 = vld [vmem:[#allocation2 + $0xd0] sm:$0xff]  ;;  %v391_v10 = vld [vmem:[#allocation2 + $0x1e0] sm:$0xff]  ;;  %421 = vmatpush.msra.mxu1 %v393_v7  ;;  %s890_s21 = sshll.u32 %s1161_s25, 4 }
  0x16   : > { %462 = vmatpush.msra.mxu3 %v392_v4  ;;  %402 = vmatpush.msra.mxu0 %v359_v6  ;;  %v356_v11 = vld [vmem:[#allocation2 + $0xc8] sm:$0xff]  ;;  %v355_v13 = vld [vmem:[#allocation2 + $0xc0] sm:$0xff]  ;;  %v389_v14 = vld [vmem:[#allocation2 + $0x1d0] sm:$0xff]  ;;  %s323_s26 = scalar_lea.vmem %s1151_s0, %s890_s21  ;;  %s328_s12 = scalar_lea.vmem %s1158_s7, %s890_s21 }
  0x17   : > { %v388_v12 = vld [vmem:[#allocation2 + $0x1c8] sm:$0xff]  ;;  %443 = vmatpush.msra.mxu2 %v358_v5  ;;  %422 = vmatpush.msra.mxu1 %v391_v10  ;;  %v354_v15 = vld [vmem:[#allocation2 + $0xb8] sm:$0xff]  ;;  %v353_v17 = vld [vmem:[#allocation2 + $0xb0] sm:$0xff] }
  0x18   : > { %463 = vmatpush.msra.mxu3 %v390_v8  ;;  %403 = vmatpush.msra.mxu0 %v357_v9  ;;  %v386_v16 = vld [vmem:[#allocation2 + $0x1b8] sm:$0xff]  ;;  %v387_v18 = vld [vmem:[#allocation2 + $0x1c0] sm:$0xff]  ;;  %v352_v19 = vld [vmem:[#allocation2 + $0xa8] sm:$0xff] }
  0x19   : > { %444 = vmatpush.msra.mxu2 %v356_v11  ;;  %423 = vmatpush.msra.mxu1 %v389_v14  ;;  %v384_v20 = vld [vmem:[#allocation2 + $0x1a8] sm:$0xff]  ;;  %v351_v21 = vld [vmem:[#allocation2 + $0xa0] sm:$0xff]  ;;  %v385_v22 = vld [vmem:[#allocation2 + $0x1b0] sm:$0xff] }
  0x1a   : > { %464 = vmatpush.msra.mxu3 %v388_v12  ;;  %404 = vmatpush.msra.mxu0 %v355_v13  ;;  %v350_v23 = vld [vmem:[#allocation2 + $0x98] sm:$0xff]  ;;  %v349_v25 = vld [vmem:[#allocation2 + $0x90] sm:$0xff]  ;;  %v383_v26 = vld [vmem:[#allocation2 + $0x1a0] sm:$0xff] }
  0x1b   : > { %445 = vmatpush.msra.mxu2 %v354_v15  ;;  %424 = vmatpush.msra.mxu1 %v387_v18  ;;  %v382_v24 = vld [vmem:[#allocation2 + $0x198] sm:$0xff]  ;;  %v348_v27 = vld [vmem:[#allocation2 + $0x88] sm:$0xff]  ;;  %v347_v29 = vld [vmem:[#allocation2 + $0x80] sm:$0xff] }
  0x1c   : > { %465 = vmatpush.msra.mxu3 %v386_v16  ;;  %405 = vmatpush.msra.mxu0 %v353_v17  ;;  %v380_v28 = vld [vmem:[#allocation2 + $0x188] sm:$0xff]  ;;  %v381_v30 = vld [vmem:[#allocation2 + $0x190] sm:$0xff]  ;;  %v346_v31 = vld [vmem:[#allocation2 + $0x78] sm:$0xff] }
  0x1d   : > { %446 = vmatpush.msra.mxu2 %v352_v19  ;;  %425 = vmatpush.msra.mxu1 %v385_v22  ;;  %v378_v32 = vld [vmem:[#allocation2 + $0x178] sm:$0xff]  ;;  %v345_v33 = vld [vmem:[#allocation2 + $0x70] sm:$0xff]  ;;  %v379_v34 = vld [vmem:[#allocation2 + $0x180] sm:$0xff] }
  0x1e   : > { %466 = vmatpush.msra.mxu3 %v384_v20  ;;  %406 = vmatpush.msra.mxu0 %v351_v21  ;;  %v344_v35 = vld [vmem:[#allocation2 + $0x68] sm:$0xff]  ;;  %v343_v37 = vld [vmem:[#allocation2 + $0x60] sm:$0xff]  ;;  %v377_v38 = vld [vmem:[#allocation2 + $0x170] sm:$0xff] }
  0x1f   : > { %447 = vmatpush.msra.mxu2 %v350_v23  ;;  %426 = vmatpush.msra.mxu1 %v383_v26  ;;  %v376_v36 = vld [vmem:[#allocation2 + $0x168] sm:$0xff]  ;;  %v342_v39 = vld [vmem:[#allocation2 + $0x58] sm:$0xff]  ;;  %v341_v41 = vld [vmem:[#allocation2 + $0x50] sm:$0xff] }
  0x20   : > { %467 = vmatpush.msra.mxu3 %v382_v24  ;;  %407 = vmatpush.msra.mxu0 %v349_v25  ;;  %v374_v40 = vld [vmem:[#allocation2 + $0x158] sm:$0xff]  ;;  %v375_v42 = vld [vmem:[#allocation2 + $0x160] sm:$0xff]  ;;  %v340_v43 = vld [vmem:[#allocation2 + $0x48] sm:$0xff] }
  0x21   : > { %448 = vmatpush.msra.mxu2 %v348_v27  ;;  %427 = vmatpush.msra.mxu1 %v381_v30  ;;  %v372_v44 = vld [vmem:[#allocation2 + $0x148] sm:$0xff]  ;;  %v339_v45 = vld [vmem:[#allocation2 + $0x40] sm:$0xff]  ;;  %v373_v46 = vld [vmem:[#allocation2 + $0x150] sm:$0xff] }
  0x22   : > { %468 = vmatpush.msra.mxu3 %v380_v28  ;;  %408 = vmatpush.msra.mxu0 %v347_v29  ;;  %v338_v47 = vld [vmem:[#allocation2 + $0x38] sm:$0xff]  ;;  %v337_v49 = vld [vmem:[#allocation2 + $0x30] sm:$0xff]  ;;  %v371_v50 = vld [vmem:[#allocation2 + $0x140] sm:$0xff] }
  0x23   : > { %449 = vmatpush.msra.mxu2 %v346_v31  ;;  %428 = vmatpush.msra.mxu1 %v379_v34  ;;  %v370_v48 = vld [vmem:[#allocation2 + $0x138] sm:$0xff]  ;;  %v336_v51 = vld [vmem:[#allocation2 + $0x28] sm:$0xff]  ;;  %v335_v53 = vld [vmem:[#allocation2 + $0x20] sm:$0xff] }
  0x24   : > { %469 = vmatpush.msra.mxu3 %v378_v32  ;;  %409 = vmatpush.msra.mxu0 %v345_v33  ;;  %v368_v52 = vld [vmem:[#allocation2 + $0x128] sm:$0xff]  ;;  %v369_v54 = vld [vmem:[#allocation2 + $0x130] sm:$0xff]  ;;  %v334_v55 = vld [vmem:[#allocation2 + $0x18] sm:$0xff] }
  0x25   : > { %450 = vmatpush.msra.mxu2 %v344_v35  ;;  %429 = vmatpush.msra.mxu1 %v377_v38  ;;  %v366_v56 = vld [vmem:[#allocation2 + $0x118] sm:$0xff]  ;;  %v333_v57 = vld [vmem:[#allocation2 + $0x10] sm:$0xff]  ;;  %v367_v58 = vld [vmem:[#allocation2 + $0x120] sm:$0xff] }
  0x26   : > { %470 = vmatpush.msra.mxu3 %v376_v36  ;;  %410 = vmatpush.msra.mxu0 %v343_v37  ;;  %v332_v59 = vld [vmem:[#allocation2 + $0x8] sm:$0xff]  ;;  %v329_v61 = vld [vmem:[%s323_s26] sm:$0xff]  ;;  %v365_v0 = vld [vmem:[#allocation2 + $0x110] sm:$0xff] }
  0x27   : > { %451 = vmatpush.msra.mxu2 %v342_v39  ;;  %430 = vmatpush.msra.mxu1 %v375_v42  ;;  %v364_v60 = vld [vmem:[#allocation2 + $0x108] sm:$0xff]  ;;  %v331_v63 = vld [vmem:[#allocation2] sm:$0xff]  ;;  %v514_v1 = vld [vmem:[#allocation4 + $0xf8] sm:$0xff] }
  0x28   : > { %471 = vmatpush.msra.mxu3 %v374_v40  ;;  %411 = vmatpush.msra.mxu0 %v341_v41  ;;  %v330_v62 = vld [vmem:[%s323_s26 + $0x8] sm:$0xff]  ;;  %v363_v2 = vld [vmem:[#allocation2 + $0x100] sm:$0xff]  ;;  %v513_v3 = vld [vmem:[#allocation4 + $0xf0] sm:$0xff] }
  0x29   : > { %452 = vmatpush.msra.mxu2 %v340_v43  ;;  %431 = vmatpush.msra.mxu1 %v373_v46  ;;  %v512_v4 = vld [vmem:[#allocation4 + $0xe8] sm:$0xff]  ;;  %v511_v5 = vld [vmem:[#allocation4 + $0xe0] sm:$0xff]  ;;  %v545_v6 = vld [vmem:[#allocation4 + $0x1f0] sm:$0xff] }
  0x2a   : > { %472 = vmatpush.msra.mxu3 %v372_v44  ;;  %412 = vmatpush.msra.mxu0 %v339_v45  ;;  %v546_v7 = vld [vmem:[#allocation4 + $0x1f8] sm:$0xff]  ;;  %v509_v9 = vld [vmem:[#allocation4 + $0xd0] sm:$0xff]  ;;  %v543_v10 = vld [vmem:[#allocation4 + $0x1e0] sm:$0xff] }
  0x2b   : > { %453 = vmatpush.msra.mxu2 %v338_v47  ;;  %432 = vmatpush.msra.mxu1 %v371_v50  ;;  %v510_v8 = vld [vmem:[#allocation4 + $0xd8] sm:$0xff]  ;;  %v544_v11 = vld [vmem:[#allocation4 + $0x1e8] sm:$0xff]  ;;  %v507_v13 = vld [vmem:[#allocation4 + $0xc0] sm:$0xff] }
  0x2c   : > { %473 = vmatpush.msra.mxu3 %v370_v48  ;;  %413 = vmatpush.msra.mxu0 %v337_v49  ;;  %v508_v12 = vld [vmem:[#allocation4 + $0xc8] sm:$0xff]  ;;  %v541_v14 = vld [vmem:[#allocation4 + $0x1d0] sm:$0xff]  ;;  %v542_v15 = vld [vmem:[#allocation4 + $0x1d8] sm:$0xff] }
  0x2d   : > { %454 = vmatpush.msra.mxu2 %v336_v51  ;;  %433 = vmatpush.msra.mxu1 %v369_v54  ;;  %v506_v16 = vld [vmem:[#allocation4 + $0xb8] sm:$0xff]  ;;  %v505_v17 = vld [vmem:[#allocation4 + $0xb0] sm:$0xff]  ;;  %v539_v18 = vld [vmem:[#allocation4 + $0x1c0] sm:$0xff] }
  0x2e   : > { %474 = vmatpush.msra.mxu3 %v368_v52  ;;  %414 = vmatpush.msra.mxu0 %v335_v53  ;;  %v540_v19 = vld [vmem:[#allocation4 + $0x1c8] sm:$0xff]  ;;  %v503_v21 = vld [vmem:[#allocation4 + $0xa0] sm:$0xff]  ;;  %v537_v22 = vld [vmem:[#allocation4 + $0x1b0] sm:$0xff] }
  0x2f   : > { %455 = vmatpush.msra.mxu2 %v334_v55  ;;  %434 = vmatpush.msra.mxu1 %v367_v58  ;;  %v504_v20 = vld [vmem:[#allocation4 + $0xa8] sm:$0xff]  ;;  %v538_v23 = vld [vmem:[#allocation4 + $0x1b8] sm:$0xff]  ;;  %v501_v25 = vld [vmem:[#allocation4 + $0x90] sm:$0xff] }
  0x30   : > { %475 = vmatpush.msra.mxu3 %v366_v56  ;;  %415 = vmatpush.msra.mxu0 %v333_v57  ;;  %v502_v24 = vld [vmem:[#allocation4 + $0x98] sm:$0xff]  ;;  %v535_v26 = vld [vmem:[#allocation4 + $0x1a0] sm:$0xff]  ;;  %v536_v27 = vld [vmem:[#allocation4 + $0x1a8] sm:$0xff] }
  0x31   : > { %456 = vmatpush.msra.mxu2 %v332_v59  ;;  %435 = vmatpush.msra.mxu1 %v365_v0  ;;  %v500_v28 = vld [vmem:[#allocation4 + $0x88] sm:$0xff]  ;;  %v499_v29 = vld [vmem:[#allocation4 + $0x80] sm:$0xff]  ;;  %v533_v30 = vld [vmem:[#allocation4 + $0x190] sm:$0xff] }
  0x32   : > { %476 = vmatpush.msra.mxu3 %v364_v60  ;;  %457 = vmatmul.f32.vlgmr.msra.gmra.mxu2 %v329_v61  ;;  %v534_v31 = vld [vmem:[#allocation4 + $0x198] sm:$0xff]  ;;  %v497_v33 = vld [vmem:[#allocation4 + $0x70] sm:$0xff]  ;;  %v531_v34 = vld [vmem:[#allocation4 + $0x180] sm:$0xff] }
  0x33   : > { %477 = vmatmul.f32.vlgmr.msra.gmra.mxu3 %v330_v62  ;;  %416 = vmatpush.msra.mxu0 %v331_v63  ;;  %v498_v32 = vld [vmem:[#allocation4 + $0x78] sm:$0xff]  ;;  %v532_v35 = vld [vmem:[#allocation4 + $0x188] sm:$0xff]  ;;  %v495_v37 = vld [vmem:[#allocation4 + $0x60] sm:$0xff] }
  0x34   : > { %417 = vmatmul.f32.vlgmr.msra.gmra.mxu0 %v329_v61  ;;  %593 = vmatpush.msrb.mxu2 %v514_v1  ;;  %v496_v36 = vld [vmem:[#allocation4 + $0x68] sm:$0xff]  ;;  %v529_v38 = vld [vmem:[#allocation4 + $0x170] sm:$0xff]  ;;  %v530_v39 = vld [vmem:[#allocation4 + $0x178] sm:$0xff] }
  0x35   : > { %436 = vmatpush.msra.mxu1 %v363_v2  ;;  %553 = vmatpush.msrb.mxu0 %v513_v3  ;;  %v494_v40 = vld [vmem:[#allocation4 + $0x58] sm:$0xff]  ;;  %v493_v41 = vld [vmem:[#allocation4 + $0x50] sm:$0xff]  ;;  %v527_v42 = vld [vmem:[#allocation4 + $0x160] sm:$0xff] }
  0x36   : > { %437 = vmatmul.f32.vlgmr.msra.gmra.mxu1 %v330_v62  ;;  %594 = vmatpush.msrb.mxu2 %v512_v4  ;;  %v528_v43 = vld [vmem:[#allocation4 + $0x168] sm:$0xff]  ;;  %v491_v45 = vld [vmem:[#allocation4 + $0x40] sm:$0xff]  ;;  %v525_v46 = vld [vmem:[#allocation4 + $0x150] sm:$0xff] }
  0x37   : > { %554 = vmatpush.msrb.mxu0 %v511_v5  ;;  %573 = vmatpush.msrb.mxu1 %v545_v6  ;;  %v492_v44 = vld [vmem:[#allocation4 + $0x48] sm:$0xff]  ;;  %v526_v47 = vld [vmem:[#allocation4 + $0x158] sm:$0xff]  ;;  %v489_v48 = vld [vmem:[#allocation4 + $0x30] sm:$0xff] }
  0x38   : > { %613 = vmatpush.msrb.mxu3 %v546_v7  ;;  %595 = vmatpush.msrb.mxu2 %v510_v8  ;;  %v523_v49 = vld [vmem:[#allocation4 + $0x140] sm:$0xff]  ;;  %v490_v50 = vld [vmem:[#allocation4 + $0x38] sm:$0xff]  ;;  %v524_v51 = vld [vmem:[#allocation4 + $0x148] sm:$0xff] }
  0x39   : > { %555 = vmatpush.msrb.mxu0 %v509_v9  ;;  %574 = vmatpush.msrb.mxu1 %v543_v10  ;;  %v487_v52 = vld [vmem:[#allocation4 + $0x20] sm:$0xff]  ;;  %v521_v53 = vld [vmem:[#allocation4 + $0x130] sm:$0xff]  ;;  %v488_v54 = vld [vmem:[#allocation4 + $0x28] sm:$0xff] }
  0x3a   : > { %614 = vmatpush.msrb.mxu3 %v544_v11  ;;  %596 = vmatpush.msrb.mxu2 %v508_v12  ;;  %v522_v55 = vld [vmem:[#allocation4 + $0x138] sm:$0xff]  ;;  %v485_v56 = vld [vmem:[#allocation4 + $0x10] sm:$0xff]  ;;  %v519_v57 = vld [vmem:[#allocation4 + $0x120] sm:$0xff] }
  0x3b   : > { %556 = vmatpush.msrb.mxu0 %v507_v13  ;;  %575 = vmatpush.msrb.mxu1 %v541_v14  ;;  %v486_v58 = vld [vmem:[#allocation4 + $0x18] sm:$0xff]  ;;  %v520_v59 = vld [vmem:[#allocation4 + $0x128] sm:$0xff]  ;;  %v483_v60 = vld [vmem:[#allocation4] sm:$0xff] }
  0x3c   : > { %615 = vmatpush.msrb.mxu3 %v542_v15  ;;  %597 = vmatpush.msrb.mxu2 %v506_v16  ;;  %v517_v61 = vld [vmem:[#allocation4 + $0x110] sm:$0xff]  ;;  %v484_v62 = vld [vmem:[#allocation4 + $0x8] sm:$0xff]  ;;  %v518_v63 = vld [vmem:[#allocation4 + $0x118] sm:$0xff] }
  0x3d   : > { %557 = vmatpush.msrb.mxu0 %v505_v17  ;;  %576 = vmatpush.msrb.mxu1 %v539_v18  ;;  %v515_v0 = vld [vmem:[#allocation4 + $0x100] sm:$0xff]  ;;  %v516_v1 = vld [vmem:[#allocation4 + $0x108] sm:$0xff]  ;;  %v665_v2 = vld [vmem:[#allocation6 + $0xf0] sm:$0xff] }
  0x3e   : > { %616 = vmatpush.msrb.mxu3 %v540_v19  ;;  %598 = vmatpush.msrb.mxu2 %v504_v20  ;;  %v666_v3 = vld [vmem:[#allocation6 + $0xf8] sm:$0xff]  ;;  %v663_v4 = vld [vmem:[#allocation6 + $0xe0] sm:$0xff]  ;;  %v664_v5 = vld [vmem:[#allocation6 + $0xe8] sm:$0xff] }
  0x3f   : > { %558 = vmatpush.msrb.mxu0 %v503_v21  ;;  %577 = vmatpush.msrb.mxu1 %v537_v22  ;;  %v661_v6 = vld [vmem:[#allocation6 + $0xd0] sm:$0xff]  ;;  %v662_v7 = vld [vmem:[#allocation6 + $0xd8] sm:$0xff]  ;;  %v695_v10 = vld [vmem:[#allocation6 + $0x1e0] sm:$0xff] }
  0x40   : > { %617 = vmatpush.msrb.mxu3 %v538_v23  ;;  %599 = vmatpush.msrb.mxu2 %v502_v24  ;;  %v697_v8 = vld [vmem:[#allocation6 + $0x1f0] sm:$0xff]  ;;  %v698_v9 = vld [vmem:[#allocation6 + $0x1f8] sm:$0xff]  ;;  %v659_v11 = vld [vmem:[#allocation6 + $0xc0] sm:$0xff] }
  0x41   : > { %559 = vmatpush.msrb.mxu0 %v501_v25  ;;  %578 = vmatpush.msrb.mxu1 %v535_v26  ;;  %v660_v12 = vld [vmem:[#allocation6 + $0xc8] sm:$0xff]  ;;  %v693_v14 = vld [vmem:[#allocation6 + $0x1d0] sm:$0xff]  ;;  %v694_v15 = vld [vmem:[#allocation6 + $0x1d8] sm:$0xff] }
  0x42   : > { %618 = vmatpush.msrb.mxu3 %v536_v27  ;;  %600 = vmatpush.msrb.mxu2 %v500_v28  ;;  %v696_v13 = vld [vmem:[#allocation6 + $0x1e8] sm:$0xff]  ;;  %v657_v16 = vld [vmem:[#allocation6 + $0xb0] sm:$0xff]  ;;  %v658_v17 = vld [vmem:[#allocation6 + $0xb8] sm:$0xff] }
  0x43   : > { %560 = vmatpush.msrb.mxu0 %v499_v29  ;;  %579 = vmatpush.msrb.mxu1 %v533_v30  ;;  %v691_v18 = vld [vmem:[#allocation6 + $0x1c0] sm:$0xff]  ;;  %v692_v19 = vld [vmem:[#allocation6 + $0x1c8] sm:$0xff]  ;;  %v689_v22 = vld [vmem:[#allocation6 + $0x1b0] sm:$0xff] }
  0x44   : > { %619 = vmatpush.msrb.mxu3 %v534_v31  ;;  %601 = vmatpush.msrb.mxu2 %v498_v32  ;;  %v655_v20 = vld [vmem:[#allocation6 + $0xa0] sm:$0xff]  ;;  %v656_v21 = vld [vmem:[#allocation6 + $0xa8] sm:$0xff]  ;;  %v690_v23 = vld [vmem:[#allocation6 + $0x1b8] sm:$0xff] }
  0x45   : > { %561 = vmatpush.msrb.mxu0 %v497_v33  ;;  %580 = vmatpush.msrb.mxu1 %v531_v34  ;;  %v653_v24 = vld [vmem:[#allocation6 + $0x90] sm:$0xff]  ;;  %v654_v25 = vld [vmem:[#allocation6 + $0x98] sm:$0xff]  ;;  %v687_v26 = vld [vmem:[#allocation6 + $0x1a0] sm:$0xff] }
  0x46   : > { %620 = vmatpush.msrb.mxu3 %v532_v35  ;;  %602 = vmatpush.msrb.mxu2 %v496_v36  ;;  %v688_v27 = vld [vmem:[#allocation6 + $0x1a8] sm:$0xff]  ;;  %v651_v28 = vld [vmem:[#allocation6 + $0x80] sm:$0xff]  ;;  %v685_v30 = vld [vmem:[#allocation6 + $0x190] sm:$0xff] }
  0x47   : > { %562 = vmatpush.msrb.mxu0 %v495_v37  ;;  %581 = vmatpush.msrb.mxu1 %v529_v38  ;;  %v652_v29 = vld [vmem:[#allocation6 + $0x88] sm:$0xff]  ;;  %v686_v31 = vld [vmem:[#allocation6 + $0x198] sm:$0xff]  ;;  %v649_v32 = vld [vmem:[#allocation6 + $0x70] sm:$0xff] }
  0x48   : > { %621 = vmatpush.msrb.mxu3 %v530_v39  ;;  %603 = vmatpush.msrb.mxu2 %v494_v40  ;;  %v650_v33 = vld [vmem:[#allocation6 + $0x78] sm:$0xff]  ;;  %v395_v34 = vld [vmem:[%s1153_s2] sm:$0x3]  ;;  %v684_v36 = vld [vmem:[#allocation6 + $0x188] sm:$0xff] }
  0x49   : > { %563 = vmatpush.msrb.mxu0 %v493_v41  ;;  %582 = vmatpush.msrb.mxu1 %v527_v42  ;;  %v683_v35 = vld [vmem:[#allocation6 + $0x180] sm:$0xff]  ;;  %v648_v38 = vld [vmem:[#allocation6 + $0x68] sm:$0xff]  ;;  %v681_v39 = vld [vmem:[#allocation6 + $0x170] sm:$0xff]  ;;  %v397_v41 = vperm.slane %v395_v34, 0 }
  0x4a   : > { %622 = vmatpush.msrb.mxu3 %v528_v43  ;;  %604 = vmatpush.msrb.mxu2 %v492_v44  ;;  %v647_v37 = vld [vmem:[#allocation6 + $0x60] sm:$0xff]  ;;  %v682_v40 = vld [vmem:[#allocation6 + $0x178] sm:$0xff]  ;;  %v645_v42 = vld [vmem:[#allocation6 + $0x50] sm:$0xff] }
  0x4b   : > { %564 = vmatpush.msrb.mxu0 %v491_v45  ;;  %583 = vmatpush.msrb.mxu1 %v525_v46  ;;  %v646_v43 = vld [vmem:[#allocation6 + $0x58] sm:$0xff]  ;;  %v643_v44 = vld [vmem:[#allocation6 + $0x40] sm:$0xff]  ;;  %v644_v45 = vld [vmem:[#allocation6 + $0x48] sm:$0xff] }
  0x4c   : > { %623 = vmatpush.msrb.mxu3 %v526_v47  ;;  %605 = vmatpush.msrb.mxu2 %v490_v50 }
  0x4d   : > { %565 = vmatpush.msrb.mxu0 %v489_v48  ;;  %584 = vmatpush.msrb.mxu1 %v523_v49  ;;  %v398_v48 = vperm.slane %v395_v34, 1 }
  0x4e   : > { %624 = vmatpush.msrb.mxu3 %v524_v51  ;;  %606 = vmatpush.msrb.mxu2 %v488_v54 }
  0x4f   : > { %566 = vmatpush.msrb.mxu0 %v487_v52  ;;  %585 = vmatpush.msrb.mxu1 %v521_v53 }
  0x50   : > { %625 = vmatpush.msrb.mxu3 %v522_v55  ;;  %607 = vmatpush.msrb.mxu2 %v486_v58  ;;  %v679_v58 = vld [vmem:[#allocation6 + $0x160] sm:$0xff] }
  0x51   : > { %567 = vmatpush.msrb.mxu0 %v485_v56  ;;  %586 = vmatpush.msrb.mxu1 %v519_v57  ;;  %v641_v57 = vld [vmem:[#allocation6 + $0x30] sm:$0xff] }
  0x52   : > { %626 = vmatpush.msrb.mxu3 %v520_v59  ;;  %608 = vmatpush.msrb.mxu2 %v484_v62  ;;  %v642_v59 = vld [vmem:[#allocation6 + $0x38] sm:$0xff]  ;;  %v677_v62 = vld [vmem:[#allocation6 + $0x150] sm:$0xff] }
  0x53   : > { %568 = vmatpush.msrb.mxu0 %v483_v60  ;;  %587 = vmatpush.msrb.mxu1 %v517_v61  ;;  %v680_v60 = vld [vmem:[#allocation6 + $0x168] sm:$0xff]  ;;  %v639_v61 = vld [vmem:[#allocation6 + $0x20] sm:$0xff] }
  0x54   : > { %627 = vmatpush.msrb.mxu3 %v518_v63  ;;  %745 = vmatpush.msra.mxu2 %v666_v3  ;;  %v640_v63 = vld [vmem:[#allocation6 + $0x28] sm:$0xff]  ;;  %v638_v3 = vld [vmem:[#allocation6 + $0x18] sm:$0xff] }
  0x55   : > { %588 = vmatpush.msrb.mxu1 %v515_v0  ;;  %705 = vmatpush.msra.mxu0 %v665_v2  ;;  %v678_v0 = vld [vmem:[#allocation6 + $0x158] sm:$0xff]  ;;  %v675_v2 = vld [vmem:[#allocation6 + $0x140] sm:$0xff] }
  0x56   : > { %628 = vmatpush.msrb.mxu3 %v516_v1  ;;  %746 = vmatpush.msra.mxu2 %v664_v5  ;;  %v637_v1 = vld [vmem:[#allocation6 + $0x10] sm:$0xff]  ;;  %v635_v5 = vld [vmem:[#allocation6] sm:$0xff] }
  0x57   : > { %706 = vmatpush.msra.mxu0 %v663_v4  ;;  %725 = vmatpush.msra.mxu1 %v697_v8  ;;  %v676_v4 = vld [vmem:[#allocation6 + $0x148] sm:$0xff]  ;;  %v674_v8 = vld [vmem:[#allocation6 + $0x138] sm:$0xff] }
  0x58   : > { %765 = vmatpush.msra.mxu3 %v698_v9  ;;  %747 = vmatpush.msra.mxu2 %v662_v7  ;;  %v636_v7 = vld [vmem:[#allocation6 + $0x8] sm:$0xff]  ;;  %v671_v9 = vld [vmem:[#allocation6 + $0x120] sm:$0xff] }
  0x59   : > { %707 = vmatpush.msra.mxu0 %v661_v6  ;;  %726 = vmatpush.msra.mxu1 %v695_v10  ;;  %v673_v6 = vld [vmem:[#allocation6 + $0x130] sm:$0xff]  ;;  %v672_v10 = vld [vmem:[#allocation6 + $0x128] sm:$0xff] }
  0x5a   : > { %766 = vmatpush.msra.mxu3 %v696_v13  ;;  %748 = vmatpush.msra.mxu2 %v660_v12  ;;  %v670_v12 = vld [vmem:[#allocation6 + $0x118] sm:$0xff]  ;;  %v667_v13 = vld [vmem:[#allocation6 + $0x100] sm:$0xff] }
  0x5b   : > { %708 = vmatpush.msra.mxu0 %v659_v11  ;;  %727 = vmatpush.msra.mxu1 %v693_v14  ;;  %v669_v11 = vld [vmem:[#allocation6 + $0x110] sm:$0xff]  ;;  %v668_v14 = vld [vmem:[#allocation6 + $0x108] sm:$0xff] }
  0x5c   : > { %767 = vmatpush.msra.mxu3 %v694_v15  ;;  %749 = vmatpush.msra.mxu2 %v658_v17  ;;  %v547_v15 = vld [vmem:[%s1155_s4] sm:$0x3] }
  0x5d   : > { %709 = vmatpush.msra.mxu0 %v657_v16  ;;  %728 = vmatpush.msra.mxu1 %v691_v18  ;;  %v549_v16 = vperm.slane %v547_v15, 0 }
  0x5e   : > { %768 = vmatpush.msra.mxu3 %v692_v19  ;;  %750 = vmatpush.msra.mxu2 %v656_v21  ;;  %v550_v19 = vperm.slane %v547_v15, 1 }
  0x5f   : > { %710 = vmatpush.msra.mxu0 %v655_v20  ;;  %729 = vmatpush.msra.mxu1 %v689_v22 }
  0x60   : > { %769 = vmatpush.msra.mxu3 %v690_v23  ;;  %751 = vmatpush.msra.mxu2 %v654_v25 }
  0x61   : > { %711 = vmatpush.msra.mxu0 %v653_v24  ;;  %730 = vmatpush.msra.mxu1 %v687_v26 }
  0x62   : > { %770 = vmatpush.msra.mxu3 %v688_v27  ;;  %752 = vmatpush.msra.mxu2 %v652_v29 }
  0x63   : > { %712 = vmatpush.msra.mxu0 %v651_v28  ;;  %731 = vmatpush.msra.mxu1 %v685_v30  ;;  %v699_v28 = vld [vmem:[%s1157_s6] sm:$0x3] }
  0x64   : > { %771 = vmatpush.msra.mxu3 %v686_v31  ;;  %753 = vmatpush.msra.mxu2 %v650_v33  ;;  %v701_v29 = vperm.slane %v699_v28, 0  ;;  %v702_v34 = vperm.slane %v699_v28, 1 }
  0x65   : > { %713 = vmatpush.msra.mxu0 %v649_v32  ;;  %732 = vmatpush.msra.mxu1 %v683_v35 }
  0x66   : > { %772 = vmatpush.msra.mxu3 %v684_v36  ;;  %754 = vmatpush.msra.mxu2 %v648_v38 }
  0x67   : > { %714 = vmatpush.msra.mxu0 %v647_v37  ;;  %733 = vmatpush.msra.mxu1 %v681_v39 }
  0x68   : > { %773 = vmatpush.msra.mxu3 %v682_v40  ;;  %755 = vmatpush.msra.mxu2 %v646_v43 }
  0x69   : > { %715 = vmatpush.msra.mxu0 %v645_v42  ;;  %734 = vmatpush.msra.mxu1 %v679_v58 }
  0x6a   : > { %756 = vmatpush.msra.mxu2 %v644_v45  ;;  %774 = vmatpush.msra.mxu3 %v680_v60 }
  0x6b   : > { %716 = vmatpush.msra.mxu0 %v643_v44  ;;  %735 = vmatpush.msra.mxu1 %v677_v62 }
  0x6c   : > { %757 = vmatpush.msra.mxu2 %v642_v59  ;;  %775 = vmatpush.msra.mxu3 %v678_v0 }
  0x6d   : > { %717 = vmatpush.msra.mxu0 %v641_v57  ;;  %736 = vmatpush.msra.mxu1 %v675_v2 }
  0x6e   : > { %758 = vmatpush.msra.mxu2 %v640_v63  ;;  %776 = vmatpush.msra.mxu3 %v676_v4 }
  0x6f   : > { %718 = vmatpush.msra.mxu0 %v639_v61  ;;  %737 = vmatpush.msra.mxu1 %v673_v6 }
  0x70   : > { %759 = vmatpush.msra.mxu2 %v638_v3  ;;  %777 = vmatpush.msra.mxu3 %v674_v8 }
  0x71   : > { %719 = vmatpush.msra.mxu0 %v637_v1  ;;  %738 = vmatpush.msra.mxu1 %v671_v9 }
  0x72   : > { %760 = vmatpush.msra.mxu2 %v636_v7  ;;  %778 = vmatpush.msra.mxu3 %v672_v10 }
  0x73   : > { %720 = vmatpush.msra.mxu0 %v635_v5  ;;  %739 = vmatpush.msra.mxu1 %v669_v11 }
  0x74   : > { %779 = vmatpush.msra.mxu3 %v670_v12 }
  0x75   : > { %740 = vmatpush.msra.mxu1 %v667_v13 }
  0x76   : > { %780 = vmatpush.msra.mxu3 %v668_v14 }
  0xb1   : > { %v418_v46 = vpop.f32.mrf.mxu0 }
  0xb2   : > { %v419_v47 = vadd.f32 %v418_v46, %v397_v41 }
  0xb3   : > { %v438_v49 = vpop.f32.mrf.mxu1 }
  0xb4   : > { %v439_v50 = vadd.f32 %v438_v49, %v419_v47 }
  0xb5   : > { %v458_v51 = vpop.f32.mrf.mxu2 }
  0xb6   : > { %v478_v52 = vpop.f32.mrf.mxu3  ;;  %v481_v53 = vmax.f32 %v439_v50, 0.0  ;;  %v459_v54 = vadd.f32 %v458_v51, %v398_v48 }
  0xb8   : > { %v479_v55 = vadd.f32 %v478_v52, %v459_v54  ;;  %569 = vmatmul.f32.vlgmr.msrb.gmra.mxu0 %v481_v53  ;;  %609 = vmatmul.f32.vlgmr.msrb.gmra.mxu2 %v481_v53 }
  0xba   : > { %v482_v56 = vmax.f32 %v479_v55, 0.0 }
  0xbc   : > { %589 = vmatmul.f32.vlgmr.msrb.gmra.mxu1 %v482_v56  ;;  %629 = vmatmul.f32.vlgmr.msrb.gmra.mxu3 %v482_v56 }
 0x135   : > { %v570_v17 = vpop.f32.mrf.mxu0 }
 0x136   : > { %v571_v18 = vadd.f32 %v570_v17, %v549_v16 }
 0x139   : > { %v590_v20 = vpop.f32.mrf.mxu1 }
 0x13a   : > { %v591_v21 = vadd.f32 %v590_v20, %v571_v18 }
 0x13b   : > { %v610_v22 = vpop.f32.mrf.mxu2 }
 0x13c   : > { %v633_v23 = vmax.f32 %v591_v21, 0.0  ;;  %v611_v24 = vadd.f32 %v610_v22, %v550_v19 }
 0x13e   : > { %721 = vmatmul.f32.vlgmr.msra.gmra.mxu0 %v633_v23  ;;  %761 = vmatmul.f32.vlgmr.msra.gmra.mxu2 %v633_v23 }
 0x13f   : > { %v630_v25 = vpop.f32.mrf.mxu3 }
 0x140   : > { %v631_v26 = vadd.f32 %v630_v25, %v611_v24 }
 0x142   : > { %v634_v27 = vmax.f32 %v631_v26, 0.0 }
 0x144   : > { %741 = vmatmul.f32.vlgmr.msra.gmra.mxu1 %v634_v27  ;;  %781 = vmatmul.f32.vlgmr.msra.gmra.mxu3 %v634_v27 }
 0x1bb   : > { %v722_v30 = vpop.f32.mrf.mxu0 }
 0x1bc   : > { %v723_v31 = vadd.f32 %v722_v30, %v701_v29 }
 0x1c1   : > { %v742_v32 = vpop.f32.mrf.mxu1  ;;  %v762_v35 = vpop.f32.mrf.mxu2 }
 0x1c2   : > { %v743_v33 = vadd.f32 %v742_v32, %v723_v31  ;;  %v763_v36 = vadd.f32 %v762_v35, %v702_v34 }
 0x1c4   : > { %785 = vst [vmem:[%s328_s12] sm:$0xff] %v743_v33 }
 0x1c7   : > { %v782_v37 = vpop.f32.mrf.mxu3 }
 0x1c8   : > { %v783_v38 = vadd.f32 %v782_v37, %v763_v36 }
 0x1ca   : > { %786 = vst [vmem:[%s328_s12 + $0x8] sm:$0xff] %v783_v38 }
 0x1cb PF: > { %s19_s24 = sadd.s32 1, %s1037_s24  }
 0x1cc   : > { %p16_p7 = scmp.ge.s32.totalorder %s19_s24, 4  }
 0x1ce   :  { %18 = sbr.rel (!%p16_p7) target bundleno = 2 (0x2), region = 91 }
 0x1d3   :  { %808 = vsyncpa [#allocation3], 1 }
 0x1d4   :  { %810 = vsyncpa [#allocation3 + $0x1], 1 }
 0x1d5   :  { %811 = vsyncpa [#allocation5], 1 }

</bundles_post_ra>
